<compile_context>
chip_gen: v6e
topology: v6e:2x2x1
jax: 0.10.0
libtpu: 0.0.40
codegen_flags: <defaults>
</compile_context>

<pallas_src>
import jax
import jax.numpy as jnp
from jax.experimental import pallas as pl
from jax.experimental.pallas import tpu as pltpu


# ----------------------------------------------------------------------------
# helpers mirroring MixConv.split_channels
# ----------------------------------------------------------------------------
def _split_channels(channels, kernel_count):
    split = [channels // kernel_count] * kernel_count
    split[0] += channels - sum(split)
    return split


def _round_up(x, m):
    return ((x + m - 1) // m) * m


# ----------------------------------------------------------------------------
# static "patch plan": which (row-range, channel-range, lane-offset) each
# conv tap occupies in the on-chip patch matrix.
# ----------------------------------------------------------------------------
def _build_patch_plan(split_in, kernel_sizes, paddings, p_max, w_pad):
    plan = []
    row0 = 0
    c0 = 0
    for ci, k, p in zip(split_in, kernel_sizes, paddings):
        delta = p_max - p
        for dh in range(k):
            for dw in range(k):
                off = (dh + delta) * w_pad + (dw + delta)
                plan.append((row0, c0, ci, off))
                row0 += ci
        c0 += ci
    return plan, row0  # row0 == K_total


# ----------------------------------------------------------------------------
# Pallas kernel: on-chip im2col -> (Cout, K) @ (K, lanes) -> +shift -> ReLU
# ----------------------------------------------------------------------------
def _make_kernel(plan, lanes_out):
    def kernel(x_ref, w_ref, shift_ref, o_ref, a_ref):
        # x_ref:     (1, C, lanes_ext)  flattened zero-padded image (one batch elem)
        # w_ref:     (Cout, K_total)    BN-scale-folded block-diagonal weights
        # shift_ref: (Cout, 1)          BN shift
        # o_ref:     (1, Cout, lanes_out)
        # a_ref:     (K_total, lanes_out) VMEM scratch = on-chip im2col matrix
        x = x_ref[0]                                       # (C, lanes_ext)
        for row0, c0, c_len, off in plan:                  # static, unrolled
            a_ref[row0:row0 + c_len, :] = x[c0:c0 + c_len, off:off + lanes_out]
        acc = jnp.dot(w_ref[...], a_ref[...],
                      preferred_element_type=jnp.float32)  # (Cout, lanes_out)
        y = acc + shift_ref[...]
        o_ref[0] = jnp.maximum(y, 0.0).astype(o_ref.dtype)

    return kernel


# ----------------------------------------------------------------------------
# MixConvBlock forward (NCHW in / NCHW out)
# ----------------------------------------------------------------------------
def mix_conv_block(x, fused_params, kernel_sizes, paddings, stride=1,
                   compute_dtype=jnp.float32):
    """MixConv (groups=1, bias=False) + eval-mode BatchNorm + ReLU."""
    N, C, H, W = x.shape
    p_max = max(paddings)
    h_pad, w_pad = H + 2 * p_max, W + 2 * p_max
    split_in = _split_channels(C, len(kernel_sizes))

    houts = [(H + 2 * p - k) // stride + 1 for k, p in zip(kernel_sizes, paddings)]
    wouts = [(W + 2 * p - k) // stride + 1 for k, p in zip(kernel_sizes, paddings)]
    assert len(set(houts)) == 1 and len(set(wouts)) == 1, \
        "all MixConv splits must produce equal spatial output sizes"
    hout, wout = houts[0], wouts[0]

    plan, k_total = _build_patch_plan(split_in, kernel_sizes, paddings, p_max, w_pad)
    assert k_total == fused_params["w_mat"].shape[1]

    max_off = max(off for (_, _, _, off) in plan)
    L = h_pad * w_pad
    lanes_out = _round_up(L, 128)                    # lane-dense output width
    lanes_ext = _round_up(max_off + lanes_out, 128)  # input halo for the taps

    # Single cheap spatial zero-pad of the raw input (no k^2 im2col in HBM),
    # flattened so the spatial grid sits on the lane axis.
    xp = jnp.pad(x, ((0, 0), (0, 0), (p_max, p_max), (p_max, p_max)))
    x_flat = xp.reshape(N, C, L)
    x_flat = jnp.pad(x_flat, ((0, 0), (0, 0), (0, lanes_ext - L)))
    x_flat = x_flat.astype(compute_dtype)

    w_mat = fused_params["w_mat"].astype(compute_dtype)   # (Cout, K_total)
    shift = fused_params["shift"]                         # (Cout, 1) f32
    cout = w_mat.shape[0]

    out_flat = pl.pallas_call(
        _make_kernel(plan, lanes_out),
        out_shape=jax.ShapeDtypeStruct((N, cout, lanes_out), jnp.float32),
        grid_spec=pltpu.PrefetchScalarGridSpec(
            num_scalar_prefetch=0,
            grid=(N,),
            in_specs=[
                pl.BlockSpec((1, C, lanes_ext), lambda n: (n, 0, 0)),
                pl.BlockSpec((cout, k_total), lambda n: (0, 0)),
                pl.BlockSpec((cout, 1), lambda n: (0, 0)),
            ],
            out_specs=pl.BlockSpec((1, cout, lanes_out), lambda n: (n, 0, 0)),
            scratch_shapes=[pltpu.VMEM((k_total, lanes_out), compute_dtype)],
        ),
        compiler_params=pltpu.CompilerParams(
            dimension_semantics=("parallel",)),
    )(x_flat, w_mat, shift)

    # Valid region of the dense padded-grid output -> (strided) NCHW output.
    out_grid = out_flat[:, :, :L].reshape(N, cout, h_pad, w_pad)
    out = out_grid[:, :,
                   0:(hout - 1) * stride + 1:stride,
                   0:(wout - 1) * stride + 1:stride]
    return out


# ----------------------------------------------------------------------------
# deterministic parameter construction + one-time fusion (BN scale -> weights)
# ----------------------------------------------------------------------------
def make_params(key, in_channels, out_channels, kernel_sizes, bn_eps=1e-5):
    split_in = _split_channels(in_channels, len(kernel_sizes))
    split_out = _split_channels(out_channels, len(kernel_sizes))

    keys = jax.random.split(key, len(kernel_sizes) + 4)
    weights = []
    for i, k in enumerate(kernel_sizes):
        fan_in = split_in[i] * k * k
        w = jax.random.normal(keys[i], (split_out[i], split_in[i], k, k),
                              jnp.float32) * (2.0 / fan_in) ** 0.5
        weights.append(w)

    gamma = 1.0 + 0.1 * jax.random.normal(keys[-4], (out_channels,), jnp.float32)
    beta = 0.1 * jax.random.normal(keys[-3], (out_channels,), jnp.float32)
    running_mean = 0.1 * jax.random.normal(keys[-2], (out_channels,), jnp.float32)
    running_var = jnp.abs(jax.random.normal(keys[-1], (out_channels,),
                                            jnp.float32)) + 0.5
    return {"weights": weights, "gamma": gamma, "beta": beta,
            "running_mean": running_mean, "running_var": running_var,
            "bn_eps": bn_eps}


def fuse_params(raw, in_channels, kernel_sizes):
    """Fold the eval-mode BN scale into the conv weights and pack all splits
    into one block-diagonal (Cout_total, K_total) matmul weight.  Done once at
    parameter-build time so it is free per forward call."""
    split_in = _split_channels(in_channels, len(kernel_sizes))
    scale = raw["gamma"] / jnp.sqrt(raw["running_var"] + raw["bn_eps"])
    shift = raw["beta"] - raw["running_mean"] * scale

    k_offs, k_total = [], 0
    for ci, k in zip(split_in, kernel_sizes):
        k_offs.append(k_total)
        k_total += ci * k * k

    cout_total = int(scale.shape[0])
    w_mat = jnp.zeros((cout_total, k_total), jnp.float32)
    c_out0 = 0
    for i, (ci, k) in enumerate(zip(split_in, kernel_sizes)):
        w = raw["weights"][i]                                # (Cout_i, ci, k, k)
        co_i = w.shape[0]
        # row order of the on-chip patch matrix: (dh, dw) outer, channel inner
        w2 = w.transpose(0, 2, 3, 1).reshape(co_i, k * k * ci)
        w2 = w2 * scale[c_out0:c_out0 + co_i][:, None]
        w_mat = w_mat.at[c_out0:c_out0 + co_i,
                         k_offs[i]:k_offs[i] + k * k * ci].set(w2)
        c_out0 += co_i
    return {"w_mat": w_mat, "shift": shift.reshape(cout_total, 1)}


# ----------------------------------------------------------------------------
# pure-JAX reference (for a self-check only)
# ----------------------------------------------------------------------------
def reference_forward(x, raw, kernel_sizes, paddings, stride=1):
    split_in = _split_channels(x.shape[1], len(kernel_sizes))
    outs, c0 = [], 0
    for i, (k, p) in enumerate(zip(kernel_sizes, paddings)):
        ci = split_in[i]
        xi = x[:, c0:c0 + ci]
        c0 += ci
        o = jax.lax.conv_general_dilated(
            xi, raw["weights"][i], window_strides=(stride, stride),
            padding=[(p, p), (p, p)],
            dimension_numbers=("NCHW", "OIHW", "NCHW"))
        outs.append(o)
    y = jnp.concatenate(outs, axis=1)
    scale = raw["gamma"] / jnp.sqrt(raw["running_var"] + raw["bn_eps"])
    shift = raw["beta"] - raw["running_mean"] * scale
    y = y * scale[None, :, None, None] + shift[None, :, None, None]
    return jnp.maximum(y, 0.0)


if __name__ == "__main__":
    # MixConvBlock(in_channels=8, out_channels=8, kernel_size=[3, 5],
    #              stride=1, padding=[1, 2])   -- groups=1, bias=False defaults
    in_channels, out_channels = 8, 8
    kernel_sizes, paddings, stride = [3, 5], [1, 2], 1

    key = jax.random.PRNGKey(0)
    k_x, k_p = jax.random.split(key)
    x = jax.random.normal(k_x, (2, in_channels, 16, 16), jnp.float32)

    raw = make_params(k_p, in_channels, out_channels, kernel_sizes)
    fused = fuse_params(raw, in_channels, kernel_sizes)

    out = mix_conv_block(x, fused, kernel_sizes, paddings, stride)
    out = jax.block_until_ready(out)
    assert out.shape == (2, out_channels, 16, 16), out.shape

    ref = jax.block_until_ready(
        reference_forward(x, raw, kernel_sizes, paddings, stride))
    err = float(jnp.max(jnp.abs(out - ref)))
    assert jnp.allclose(out, ref, atol=2e-3, rtol=2e-3), err

    print("KERNEL_OK")
</pallas_src>

<mosaic_0001>
module attributes {stable_mosaic.version = 11 : i64} {
  func.func @kernel(%arg0: i32, %arg1: memref<1x8x640xf32, #tpu.memory_space<vmem>>, %arg2: memref<8x136xf32, #tpu.memory_space<vmem>>, %arg3: memref<8x1xf32, #tpu.memory_space<vmem>>, %arg4: memref<1x8x512xf32, #tpu.memory_space<vmem>>, %arg5: memref<136x512xf32, #tpu.memory_space<vmem>>) attributes {dimension_semantics = [#tpu.dimension_semantics<parallel>], iteration_bounds = array<i64: 2>, scalar_prefetch = 0 : i64, scratch_operands = 1 : i64, tpu.core_type = #tpu.core_type<tc>, window_params = [{transform_indices = @transform_0, window_bounds = array<i64: 1, 8, 640>}, {pipeline_mode = #tpu.pipeline_mode<synchronous>, transform_indices = @transform_1, window_bounds = array<i64: 8, 136>}, {pipeline_mode = #tpu.pipeline_mode<synchronous>, transform_indices = @transform_2, window_bounds = array<i64: 8, 1>}, {transform_indices = @transform_3, window_bounds = array<i64: 1, 8, 512>}]} {
    %c0 = arith.constant 0 : index
    %c0_0 = arith.constant 0 : index
    %c0_1 = arith.constant 0 : index
    %0 = vector.load %arg1[%c0, %c0_0, %c0_1] : memref<1x8x640xf32, #tpu.memory_space<vmem>>, vector<1x8x640xf32>
    %1 = vector.shape_cast %0 : vector<1x8x640xf32> to vector<8x640xf32>
    %2 = vector.extract_strided_slice %1 {offsets = [0, 21], sizes = [4, 512], strides = [1, 1]} : vector<8x640xf32> to vector<4x512xf32>
    %c0_2 = arith.constant 0 : index
    %c0_3 = arith.constant 0 : index
    %3 = vector.load %arg5[%c0_2, %c0_3] : memref<136x512xf32, #tpu.memory_space<vmem>>, vector<4x512xf32>
    tpu.vector_store %arg5[%c0_2, %c0_3], %2 {strides = array<i32>} : memref<136x512xf32, #tpu.memory_space<vmem>>, vector<4x512xf32>,
    %4 = vector.extract_strided_slice %1 {offsets = [0, 22], sizes = [4, 512], strides = [1, 1]} : vector<8x640xf32> to vector<4x512xf32>
    %c4 = arith.constant 4 : index
    %c0_4 = arith.constant 0 : index
    %5 = vector.load %arg5[%c4, %c0_4] : memref<136x512xf32, #tpu.memory_space<vmem>>, vector<4x512xf32>
    tpu.vector_store %arg5[%c4, %c0_4], %4 {strides = array<i32>} : memref<136x512xf32, #tpu.memory_space<vmem>>, vector<4x512xf32>,
    %6 = vector.extract_strided_slice %1 {offsets = [0, 23], sizes = [4, 512], strides = [1, 1]} : vector<8x640xf32> to vector<4x512xf32>
    %c8 = arith.constant 8 : index
    %c0_5 = arith.constant 0 : index
    %7 = vector.load %arg5[%c8, %c0_5] : memref<136x512xf32, #tpu.memory_space<vmem>>, vector<4x512xf32>
    tpu.vector_store %arg5[%c8, %c0_5], %6 {strides = array<i32>} : memref<136x512xf32, #tpu.memory_space<vmem>>, vector<4x512xf32>,
    %8 = vector.extract_strided_slice %1 {offsets = [0, 41], sizes = [4, 512], strides = [1, 1]} : vector<8x640xf32> to vector<4x512xf32>
    %c12 = arith.constant 12 : index
    %c0_6 = arith.constant 0 : index
    %9 = vector.load %arg5[%c12, %c0_6] : memref<136x512xf32, #tpu.memory_space<vmem>>, vector<4x512xf32>
    tpu.vector_store %arg5[%c12, %c0_6], %8 {strides = array<i32>} : memref<136x512xf32, #tpu.memory_space<vmem>>, vector<4x512xf32>,
    %10 = vector.extract_strided_slice %1 {offsets = [0, 42], sizes = [4, 512], strides = [1, 1]} : vector<8x640xf32> to vector<4x512xf32>
    %c16 = arith.constant 16 : index
    %c0_7 = arith.constant 0 : index
    %11 = vector.load %arg5[%c16, %c0_7] : memref<136x512xf32, #tpu.memory_space<vmem>>, vector<4x512xf32>
    tpu.vector_store %arg5[%c16, %c0_7], %10 {strides = array<i32>} : memref<136x512xf32, #tpu.memory_space<vmem>>, vector<4x512xf32>,
    %12 = vector.extract_strided_slice %1 {offsets = [0, 43], sizes = [4, 512], strides = [1, 1]} : vector<8x640xf32> to vector<4x512xf32>
    %c20 = arith.constant 20 : index
    %c0_8 = arith.constant 0 : index
    %13 = vector.load %arg5[%c20, %c0_8] : memref<136x512xf32, #tpu.memory_space<vmem>>, vector<4x512xf32>
    tpu.vector_store %arg5[%c20, %c0_8], %12 {strides = array<i32>} : memref<136x512xf32, #tpu.memory_space<vmem>>, vector<4x512xf32>,
    %14 = vector.extract_strided_slice %1 {offsets = [0, 61], sizes = [4, 512], strides = [1, 1]} : vector<8x640xf32> to vector<4x512xf32>
    %c24 = arith.constant 24 : index
    %c0_9 = arith.constant 0 : index
    %15 = vector.load %arg5[%c24, %c0_9] : memref<136x512xf32, #tpu.memory_space<vmem>>, vector<4x512xf32>
    tpu.vector_store %arg5[%c24, %c0_9], %14 {strides = array<i32>} : memref<136x512xf32, #tpu.memory_space<vmem>>, vector<4x512xf32>,
    %16 = vector.extract_strided_slice %1 {offsets = [0, 62], sizes = [4, 512], strides = [1, 1]} : vector<8x640xf32> to vector<4x512xf32>
    %c28 = arith.constant 28 : index
    %c0_10 = arith.constant 0 : index
    %17 = vector.load %arg5[%c28, %c0_10] : memref<136x512xf32, #tpu.memory_space<vmem>>, vector<4x512xf32>
    tpu.vector_store %arg5[%c28, %c0_10], %16 {strides = array<i32>} : memref<136x512xf32, #tpu.memory_space<vmem>>, vector<4x512xf32>,
    %18 = vector.extract_strided_slice %1 {offsets = [0, 63], sizes = [4, 512], strides = [1, 1]} : vector<8x640xf32> to vector<4x512xf32>
    %c32 = arith.constant 32 : index
    %c0_11 = arith.constant 0 : index
    %19 = vector.load %arg5[%c32, %c0_11] : memref<136x512xf32, #tpu.memory_space<vmem>>, vector<4x512xf32>
    tpu.vector_store %arg5[%c32, %c0_11], %18 {strides = array<i32>} : memref<136x512xf32, #tpu.memory_space<vmem>>, vector<4x512xf32>,
    %20 = vector.extract_strided_slice %1 {offsets = [4, 0], sizes = [4, 512], strides = [1, 1]} : vector<8x640xf32> to vector<4x512xf32>
    %c36 = arith.constant 36 : index
    %c0_12 = arith.constant 0 : index
    %21 = vector.load %arg5[%c36, %c0_12] : memref<136x512xf32, #tpu.memory_space<vmem>>, vector<4x512xf32>
    tpu.vector_store %arg5[%c36, %c0_12], %20 {strides = array<i32>} : memref<136x512xf32, #tpu.memory_space<vmem>>, vector<4x512xf32>,
    %22 = vector.extract_strided_slice %1 {offsets = [4, 1], sizes = [4, 512], strides = [1, 1]} : vector<8x640xf32> to vector<4x512xf32>
    %c40 = arith.constant 40 : index
    %c0_13 = arith.constant 0 : index
    %23 = vector.load %arg5[%c40, %c0_13] : memref<136x512xf32, #tpu.memory_space<vmem>>, vector<4x512xf32>
    tpu.vector_store %arg5[%c40, %c0_13], %22 {strides = array<i32>} : memref<136x512xf32, #tpu.memory_space<vmem>>, vector<4x512xf32>,
    %24 = vector.extract_strided_slice %1 {offsets = [4, 2], sizes = [4, 512], strides = [1, 1]} : vector<8x640xf32> to vector<4x512xf32>
    %c44 = arith.constant 44 : index
    %c0_14 = arith.constant 0 : index
    %25 = vector.load %arg5[%c44, %c0_14] : memref<136x512xf32, #tpu.memory_space<vmem>>, vector<4x512xf32>
    tpu.vector_store %arg5[%c44, %c0_14], %24 {strides = array<i32>} : memref<136x512xf32, #tpu.memory_space<vmem>>, vector<4x512xf32>,
    %26 = vector.extract_strided_slice %1 {offsets = [4, 3], sizes = [4, 512], strides = [1, 1]} : vector<8x640xf32> to vector<4x512xf32>
    %c48 = arith.constant 48 : index
    %c0_15 = arith.constant 0 : index
    %27 = vector.load %arg5[%c48, %c0_15] : memref<136x512xf32, #tpu.memory_space<vmem>>, vector<4x512xf32>
    tpu.vector_store %arg5[%c48, %c0_15], %26 {strides = array<i32>} : memref<136x512xf32, #tpu.memory_space<vmem>>, vector<4x512xf32>,
    %28 = vector.extract_strided_slice %1 {offsets = [4, 4], sizes = [4, 512], strides = [1, 1]} : vector<8x640xf32> to vector<4x512xf32>
    %c52 = arith.constant 52 : index
    %c0_16 = arith.constant 0 : index
    %29 = vector.load %arg5[%c52, %c0_16] : memref<136x512xf32, #tpu.memory_space<vmem>>, vector<4x512xf32>
    tpu.vector_store %arg5[%c52, %c0_16], %28 {strides = array<i32>} : memref<136x512xf32, #tpu.memory_space<vmem>>, vector<4x512xf32>,
    %30 = vector.extract_strided_slice %1 {offsets = [4, 20], sizes = [4, 512], strides = [1, 1]} : vector<8x640xf32> to vector<4x512xf32>
    %c56 = arith.constant 56 : index
    %c0_17 = arith.constant 0 : index
    %31 = vector.load %arg5[%c56, %c0_17] : memref<136x512xf32, #tpu.memory_space<vmem>>, vector<4x512xf32>
    tpu.vector_store %arg5[%c56, %c0_17], %30 {strides = array<i32>} : memref<136x512xf32, #tpu.memory_space<vmem>>, vector<4x512xf32>,
    %32 = vector.extract_strided_slice %1 {offsets = [4, 21], sizes = [4, 512], strides = [1, 1]} : vector<8x640xf32> to vector<4x512xf32>
    %c60 = arith.constant 60 : index
    %c0_18 = arith.constant 0 : index
    %33 = vector.load %arg5[%c60, %c0_18] : memref<136x512xf32, #tpu.memory_space<vmem>>, vector<4x512xf32>
    tpu.vector_store %arg5[%c60, %c0_18], %32 {strides = array<i32>} : memref<136x512xf32, #tpu.memory_space<vmem>>, vector<4x512xf32>,
    %34 = vector.extract_strided_slice %1 {offsets = [4, 22], sizes = [4, 512], strides = [1, 1]} : vector<8x640xf32> to vector<4x512xf32>
    %c64 = arith.constant 64 : index
    %c0_19 = arith.constant 0 : index
    %35 = vector.load %arg5[%c64, %c0_19] : memref<136x512xf32, #tpu.memory_space<vmem>>, vector<4x512xf32>
    tpu.vector_store %arg5[%c64, %c0_19], %34 {strides = array<i32>} : memref<136x512xf32, #tpu.memory_space<vmem>>, vector<4x512xf32>,
    %36 = vector.extract_strided_slice %1 {offsets = [4, 23], sizes = [4, 512], strides = [1, 1]} : vector<8x640xf32> to vector<4x512xf32>
    %c68 = arith.constant 68 : index
    %c0_20 = arith.constant 0 : index
    %37 = vector.load %arg5[%c68, %c0_20] : memref<136x512xf32, #tpu.memory_space<vmem>>, vector<4x512xf32>
    tpu.vector_store %arg5[%c68, %c0_20], %36 {strides = array<i32>} : memref<136x512xf32, #tpu.memory_space<vmem>>, vector<4x512xf32>,
    %38 = vector.extract_strided_slice %1 {offsets = [4, 24], sizes = [4, 512], strides = [1, 1]} : vector<8x640xf32> to vector<4x512xf32>
    %c72 = arith.constant 72 : index
    %c0_21 = arith.constant 0 : index
    %39 = vector.load %arg5[%c72, %c0_21] : memref<136x512xf32, #tpu.memory_space<vmem>>, vector<4x512xf32>
    tpu.vector_store %arg5[%c72, %c0_21], %38 {strides = array<i32>} : memref<136x512xf32, #tpu.memory_space<vmem>>, vector<4x512xf32>,
    %40 = vector.extract_strided_slice %1 {offsets = [4, 40], sizes = [4, 512], strides = [1, 1]} : vector<8x640xf32> to vector<4x512xf32>
    %c76 = arith.constant 76 : index
    %c0_22 = arith.constant 0 : index
    %41 = vector.load %arg5[%c76, %c0_22] : memref<136x512xf32, #tpu.memory_space<vmem>>, vector<4x512xf32>
    tpu.vector_store %arg5[%c76, %c0_22], %40 {strides = array<i32>} : memref<136x512xf32, #tpu.memory_space<vmem>>, vector<4x512xf32>,
    %42 = vector.extract_strided_slice %1 {offsets = [4, 41], sizes = [4, 512], strides = [1, 1]} : vector<8x640xf32> to vector<4x512xf32>
    %c80 = arith.constant 80 : index
    %c0_23 = arith.constant 0 : index
    %43 = vector.load %arg5[%c80, %c0_23] : memref<136x512xf32, #tpu.memory_space<vmem>>, vector<4x512xf32>
    tpu.vector_store %arg5[%c80, %c0_23], %42 {strides = array<i32>} : memref<136x512xf32, #tpu.memory_space<vmem>>, vector<4x512xf32>,
    %44 = vector.extract_strided_slice %1 {offsets = [4, 42], sizes = [4, 512], strides = [1, 1]} : vector<8x640xf32> to vector<4x512xf32>
    %c84 = arith.constant 84 : index
    %c0_24 = arith.constant 0 : index
    %45 = vector.load %arg5[%c84, %c0_24] : memref<136x512xf32, #tpu.memory_space<vmem>>, vector<4x512xf32>
    tpu.vector_store %arg5[%c84, %c0_24], %44 {strides = array<i32>} : memref<136x512xf32, #tpu.memory_space<vmem>>, vector<4x512xf32>,
    %46 = vector.extract_strided_slice %1 {offsets = [4, 43], sizes = [4, 512], strides = [1, 1]} : vector<8x640xf32> to vector<4x512xf32>
    %c88 = arith.constant 88 : index
    %c0_25 = arith.constant 0 : index
    %47 = vector.load %arg5[%c88, %c0_25] : memref<136x512xf32, #tpu.memory_space<vmem>>, vector<4x512xf32>
    tpu.vector_store %arg5[%c88, %c0_25], %46 {strides = array<i32>} : memref<136x512xf32, #tpu.memory_space<vmem>>, vector<4x512xf32>,
    %48 = vector.extract_strided_slice %1 {offsets = [4, 44], sizes = [4, 512], strides = [1, 1]} : vector<8x640xf32> to vector<4x512xf32>
    %c92 = arith.constant 92 : index
    %c0_26 = arith.constant 0 : index
    %49 = vector.load %arg5[%c92, %c0_26] : memref<136x512xf32, #tpu.memory_space<vmem>>, vector<4x512xf32>
    tpu.vector_store %arg5[%c92, %c0_26], %48 {strides = array<i32>} : memref<136x512xf32, #tpu.memory_space<vmem>>, vector<4x512xf32>,
    %50 = vector.extract_strided_slice %1 {offsets = [4, 60], sizes = [4, 512], strides = [1, 1]} : vector<8x640xf32> to vector<4x512xf32>
    %c96 = arith.constant 96 : index
    %c0_27 = arith.constant 0 : index
    %51 = vector.load %arg5[%c96, %c0_27] : memref<136x512xf32, #tpu.memory_space<vmem>>, vector<4x512xf32>
    tpu.vector_store %arg5[%c96, %c0_27], %50 {strides = array<i32>} : memref<136x512xf32, #tpu.memory_space<vmem>>, vector<4x512xf32>,
    %52 = vector.extract_strided_slice %1 {offsets = [4, 61], sizes = [4, 512], strides = [1, 1]} : vector<8x640xf32> to vector<4x512xf32>
    %c100 = arith.constant 100 : index
    %c0_28 = arith.constant 0 : index
    %53 = vector.load %arg5[%c100, %c0_28] : memref<136x512xf32, #tpu.memory_space<vmem>>, vector<4x512xf32>
    tpu.vector_store %arg5[%c100, %c0_28], %52 {strides = array<i32>} : memref<136x512xf32, #tpu.memory_space<vmem>>, vector<4x512xf32>,
    %54 = vector.extract_strided_slice %1 {offsets = [4, 62], sizes = [4, 512], strides = [1, 1]} : vector<8x640xf32> to vector<4x512xf32>
    %c104 = arith.constant 104 : index
    %c0_29 = arith.constant 0 : index
    %55 = vector.load %arg5[%c104, %c0_29] : memref<136x512xf32, #tpu.memory_space<vmem>>, vector<4x512xf32>
    tpu.vector_store %arg5[%c104, %c0_29], %54 {strides = array<i32>} : memref<136x512xf32, #tpu.memory_space<vmem>>, vector<4x512xf32>,
    %56 = vector.extract_strided_slice %1 {offsets = [4, 63], sizes = [4, 512], strides = [1, 1]} : vector<8x640xf32> to vector<4x512xf32>
    %c108 = arith.constant 108 : index
    %c0_30 = arith.constant 0 : index
    %57 = vector.load %arg5[%c108, %c0_30] : memref<136x512xf32, #tpu.memory_space<vmem>>, vector<4x512xf32>
    tpu.vector_store %arg5[%c108, %c0_30], %56 {strides = array<i32>} : memref<136x512xf32, #tpu.memory_space<vmem>>, vector<4x512xf32>,
    %58 = vector.extract_strided_slice %1 {offsets = [4, 64], sizes = [4, 512], strides = [1, 1]} : vector<8x640xf32> to vector<4x512xf32>
    %c112 = arith.constant 112 : index
    %c0_31 = arith.constant 0 : index
    %59 = vector.load %arg5[%c112, %c0_31] : memref<136x512xf32, #tpu.memory_space<vmem>>, vector<4x512xf32>
    tpu.vector_store %arg5[%c112, %c0_31], %58 {strides = array<i32>} : memref<136x512xf32, #tpu.memory_space<vmem>>, vector<4x512xf32>,
    %60 = vector.extract_strided_slice %1 {offsets = [4, 80], sizes = [4, 512], strides = [1, 1]} : vector<8x640xf32> to vector<4x512xf32>
    %c116 = arith.constant 116 : index
    %c0_32 = arith.constant 0 : index
    %61 = vector.load %arg5[%c116, %c0_32] : memref<136x512xf32, #tpu.memory_space<vmem>>, vector<4x512xf32>
    tpu.vector_store %arg5[%c116, %c0_32], %60 {strides = array<i32>} : memref<136x512xf32, #tpu.memory_space<vmem>>, vector<4x512xf32>,
    %62 = vector.extract_strided_slice %1 {offsets = [4, 81], sizes = [4, 512], strides = [1, 1]} : vector<8x640xf32> to vector<4x512xf32>
    %c120 = arith.constant 120 : index
    %c0_33 = arith.constant 0 : index
    %63 = vector.load %arg5[%c120, %c0_33] : memref<136x512xf32, #tpu.memory_space<vmem>>, vector<4x512xf32>
    tpu.vector_store %arg5[%c120, %c0_33], %62 {strides = array<i32>} : memref<136x512xf32, #tpu.memory_space<vmem>>, vector<4x512xf32>,
    %64 = vector.extract_strided_slice %1 {offsets = [4, 82], sizes = [4, 512], strides = [1, 1]} : vector<8x640xf32> to vector<4x512xf32>
    %c124 = arith.constant 124 : index
    %c0_34 = arith.constant 0 : index
    %65 = vector.load %arg5[%c124, %c0_34] : memref<136x512xf32, #tpu.memory_space<vmem>>, vector<4x512xf32>
    tpu.vector_store %arg5[%c124, %c0_34], %64 {strides = array<i32>} : memref<136x512xf32, #tpu.memory_space<vmem>>, vector<4x512xf32>,
    %66 = vector.extract_strided_slice %1 {offsets = [4, 83], sizes = [4, 512], strides = [1, 1]} : vector<8x640xf32> to vector<4x512xf32>
    %c128 = arith.constant 128 : index
    %c0_35 = arith.constant 0 : index
    %67 = vector.load %arg5[%c128, %c0_35] : memref<136x512xf32, #tpu.memory_space<vmem>>, vector<4x512xf32>
    tpu.vector_store %arg5[%c128, %c0_35], %66 {strides = array<i32>} : memref<136x512xf32, #tpu.memory_space<vmem>>, vector<4x512xf32>,
    %68 = vector.extract_strided_slice %1 {offsets = [4, 84], sizes = [4, 512], strides = [1, 1]} : vector<8x640xf32> to vector<4x512xf32>
    %c132 = arith.constant 132 : index
    %c0_36 = arith.constant 0 : index
    %69 = vector.load %arg5[%c132, %c0_36] : memref<136x512xf32, #tpu.memory_space<vmem>>, vector<4x512xf32>
    tpu.vector_store %arg5[%c132, %c0_36], %68 {strides = array<i32>} : memref<136x512xf32, #tpu.memory_space<vmem>>, vector<4x512xf32>,
    %c0_37 = arith.constant 0 : index
    %c0_38 = arith.constant 0 : index
    %70 = vector.load %arg2[%c0_37, %c0_38] : memref<8x136xf32, #tpu.memory_space<vmem>>, vector<8x136xf32>
    %c0_39 = arith.constant 0 : index
    %c0_40 = arith.constant 0 : index
    %71 = vector.load %arg5[%c0_39, %c0_40] : memref<136x512xf32, #tpu.memory_space<vmem>>, vector<136x512xf32>
    %cst = arith.constant dense<0.000000e+00> : vector<8x512xf32>
    %72 = tpu.matmul %70, %71, %cst {dimension_numbers = #tpu.dot_dimension_numbers<[1], [0], [0], [1], [0, 0, 1, 1], [], []>} : vector<8x136xf32>, vector<136x512xf32>, vector<8x512xf32> -> vector<8x512xf32>
    %c0_41 = arith.constant 0 : index
    %c0_42 = arith.constant 0 : index
    %73 = vector.load %arg3[%c0_41, %c0_42] : memref<8x1xf32, #tpu.memory_space<vmem>>, vector<8x1xf32>
    %74 = vector.broadcast %73 : vector<8x1xf32> to vector<8x512xf32>
    %75 = arith.addf %72, %74 : vector<8x512xf32>
    %cst_43 = arith.constant 0.000000e+00 : f32
    %76 = vector.broadcast %cst_43 : f32 to vector<8x512xf32>
    %77 = arith.maximumf %75, %76 : vector<8x512xf32>
    %c0_44 = arith.constant 0 : index
    %c0_45 = arith.constant 0 : index
    %c0_46 = arith.constant 0 : index
    %78 = vector.load %arg4[%c0_44, %c0_45, %c0_46] : memref<1x8x512xf32, #tpu.memory_space<vmem>>, vector<1x8x512xf32>
    %79 = vector.shape_cast %78 : vector<1x8x512xf32> to vector<8x512xf32>
    %80 = vector.shape_cast %77 : vector<8x512xf32> to vector<1x8x512xf32>
    tpu.vector_store %arg4[%c0_44, %c0_45, %c0_46], %80 {strides = array<i32>} : memref<1x8x512xf32, #tpu.memory_space<vmem>>, vector<1x8x512xf32>,
    return
  }
  func.func @transform_0(%arg0: i32) -> (i32, i32, i32) {
    %c0_i32 = arith.constant 0 : i32
    %c0_i32_0 = arith.constant 0 : i32
    %c0_i32_1 = arith.constant 0 : i32
    return %arg0, %c0_i32, %c0_i32_0 : i32, i32, i32
  }
  func.func @transform_1(%arg0: i32) -> (i32, i32) {
    %c0_i32 = arith.constant 0 : i32
    %c0_i32_0 = arith.constant 0 : i32
    %c0_i32_1 = arith.constant 0 : i32
    return %c0_i32, %c0_i32_0 : i32, i32
  }
  func.func @transform_2(%arg0: i32) -> (i32, i32) {
    %c0_i32 = arith.constant 0 : i32
    %c0_i32_0 = arith.constant 0 : i32
    %c0_i32_1 = arith.constant 0 : i32
    return %c0_i32, %c0_i32_0 : i32, i32
  }
  func.func @transform_3(%arg0: i32) -> (i32, i32, i32) {
    %c0_i32 = arith.constant 0 : i32
    %c0_i32_0 = arith.constant 0 : i32
    %c0_i32_1 = arith.constant 0 : i32
    return %arg0, %c0_i32, %c0_i32_0 : i32, i32, i32
  }
}

</mosaic_0001>

<bundles_post_ra>
// kernel: tpu_custom_call.1
= control target key start
LH: loop header
LB: loop body
LE: loop exit
PB: predicated region body
PF: predicated region fallthrough
CT: control target
= control target key end

     0   :  { %8 = vsyncpa [#allocation4], 0  ;;  %s1835_s0 = inlined_call_operand.hbm [shape: f32[2,8,640], index: 0, kind: input, shape index: {}]   ;;  %s1836_s1 = inlined_call_operand.hbm [shape: f32[8,136], index: 1, kind: input, shape index: {}]   ;;  %s1837_s2 = inlined_call_operand.vmem [shape: f32[8,1], index: 2, kind: input, shape index: {}]   ;;  %s1838_s3 = inlined_call_operand.hbm [shape: f32[2,8,512], index: 3, kind: output, shape index: {}]  }
   0x1   :  { %10 = vsyncpa [#allocation4 + $0x1], 0 }
   0x2   :  { %11 = vsyncpa [#allocation7], 0 }
   0x3   :  { %12 = vsyncpa [#allocation5], 0 }
   0x4   :  { %14 = vsyncpa [#allocation5 + $0x1], 0  ;;  %s1406_s12 = smov 0   ;;  %s1408_s13 = smov 0  }
   0x5   :  { %s1410_s14 = smov 0   ;;  %s1412_s15 = smov 0  }
   0x6 LB: > { %s1427_s16 = sadd.s32 4294967295, %s1356_s15   ;;  %s1132_s17 = sadd.s32 4294967294, %s1356_s15   ;;  %s1356_s15 = sphi %s1412_s15, %s1861_s15   ;;  %s1352_s14 = sphi %s1410_s14, %s1860_s14   ;;  %s1348_s13 = sphi %s1408_s13, %s1859_s13   ;;  %s1344_s12 = sphi %s1406_s12, %s1858_s12  }
   0x7   : > { %p40_p0 = scmp.ne.s32.totalorder %s1348_s13, %s1344_s12  ;;  %p1839_p1 = scmp.eq.s32.totalorder %s1427_s16, 0 }
   0x8   : > { %p112_p3 = scmp.eq.s32.totalorder %s1132_s17, 1  ;;  %p1133_p5 = scmp.ge.s32.totalorder %s1356_s15, 1 }
   0x9   : > { %p1436_p4 = por %p1839_p1, %p40_p0  ;;  %p119_p7 = scmp.lt.s32.totalorder %s1356_s15, 3 }
   0xa   : > { %p1441_p6 = por %p112_p3, %p40_p0  ;;  %s1358_s21 = smov [#allocation6]  }
   0xb   : > { %s1843_s18 = scalar_select %p1436_p4, 1, 0 }
   0xc   : > { %s1844_s19 = scalar_select %p1441_p6, 1, 0 }
   0xd   : > { %p1446_p8 = pnand %p1133_p5, %p119_p7  ;;  %s132_s22 = sshll.u32 %s1358_s21, 4  ;;  %s133_s22 = int_to_ptr.vmem [resolvable:$true] %s132_s22 }
   0xe   : > { %s1454_s23 = sadd.s32 1, %s1356_s15   ;;  %s27_s27 = sadd.s32 1, %s1352_s14 }
   0xf   : > { %s1845_s20 = scalar_select %p1446_p8, 1, 0 }
  0x10   : > { %p1159_p10 = pneg %p1446_p8  ;;  %s24_s25 = ssub.s32 %s1356_s15, %s1454_s23 }
  0x11   : > { %p1464_p12 = scmp.eq.s32.totalorder %s24_s25, 0  ;;  %p34_p13 = scmp.ne.s32.totalorder %s1352_s14, %s1348_s13 }
  0x12   : > { %p1458_p11 = pnand %p1159_p10, %p1839_p1  ;;  %s1245_s28 = scalar_lea.vmem %s133_s22, 256 }
  0x13   : > { %p1246_p3 = scmp.ne.s32.totalorder %s133_s22, %s1245_s28  ;;  %p1253_p9 = scmp.lt.s32.totalorder %s133_s22, %s133_s22 }
  0x14   : > { %p1236_p0 = pneg %p1458_p11  ;;  %p1254_p2 = scmp.lt.s32.totalorder %s1245_s28, %s1245_s28 }
  0x16   : > { %p1248_p5 = pnand %p1246_p3, %p1236_p0  ;;  %p1255_p10 = por %p1254_p2, %p1253_p9 }
  0x18   : > { %p1249_p7 = pneg %p1248_p5 }
  0x1a   : > { %p1256_p1 = pnand %p1255_p10, %p1249_p7 }
  0x1c   : > { %1259 = shalt.err (!%p1256_p1)
}
  0x1d   : > { %1162 = dma.hbm_to_vmem [thread:$0]  (!%p1458_p11), %s1836_s1, 256, %s133_s22, [#allocation7]  }
  0x1e   : > { %s1481_s4 = scalar_select %p1464_p12, %s1352_s14, %s27_s27  }
  0x1f   : > { %p35_p1 = scmp.eq.s32.totalorder %s1356_s15, 0  ;;  %p1848_p2 = scmp.eq.s32.totalorder %s1427_s16, 1 }
  0x20   : > { %p1172_p0 = scmp.lt.s32.totalorder %s1356_s15, 2  ;;  %s146_s6 = sand.u32 1, %s1352_s14  }
  0x21   : > { %p1489_p9 = por %p1848_p2, %p34_p13  ;;  %p36_p3 = por %p35_p1, %p34_p13 }
  0x22   : > { %s1148_s7 = smul.u32 40, %s146_s6  ;;  %s147_s24 = scalar_lea.sflag [#allocation4], %s146_s6 }
  0x23   : > { %s1849_s5 = scalar_select %p1489_p9, 1, 0 }
  0x24   : > { %s1149_s8 = smul.u32 640, %s1356_s15  ;;  %p1499_p5 = pnand %p1172_p0, %p36_p3 }
  0x25   : > { %s150_s21 = scalar_lea.vmem [#allocation3], %s1148_s7  ;;  %s1265_s28 = scalar_lea.hbm %s1835_s0, 1280 }
  0x26   : > { %s1506_s17 = scalar_lea.hbm %s1835_s0, %s1149_s8  ;;  %s158_s22 = sshll.u32 %s150_s21, 4  ;;  %s159_s22 = int_to_ptr.vmem [resolvable:$true] %s158_s22 }
  0x27   : > { %s1260_s25 = scalar_lea.hbm %s1506_s17, 640  ;;  %p1262_p12 = pneg %p1499_p5 }
  0x28   : > { %p1261_p11 = scmp.ne.s32.totalorder %s1506_s17, %s1260_s25  ;;  %p1266_p10 = scmp.lt.s32.totalorder %s1506_s17, %s1835_s0 }
  0x29   : > { %p1267_p1 = scmp.lt.s32.totalorder %s1265_s28, %s1260_s25 }
  0x2a   : > { %p1263_p13 = pnand %p1262_p12, %p1261_p11 }
  0x2b   : > { %p1268_p2 = por %p1267_p1, %p1266_p10 }
  0x2c   : > { %p1264_p7 = pneg %p1263_p13 }
  0x2e   : > { %p1269_p0 = pnand %p1268_p2, %p1264_p7 }
  0x30   : > { %1272 = shalt.err (!%p1269_p0)
}
  0x31   : > { %s1273_s7 = scalar_lea.vmem %s159_s22, 640  ;;  %s1359_s6 = smov [#allocation3]  }
  0x32   : > { %p1274_p3 = scmp.ne.s32.totalorder %s159_s22, %s1273_s7  ;;  %s1278_s8 = sshll.u32 %s1359_s6, 4  ;;  %s1279_s8 = int_to_ptr.vmem [resolvable:$false] %s1278_s8 }
  0x33   : > { %s1280_s10 = scalar_lea.vmem %s1279_s8, 1280  ;;  %p1281_p11 = scmp.lt.s32.totalorder %s159_s22, %s1279_s8 }
  0x34   : > { %p1276_p6 = pnand %p1274_p3, %p1262_p12  ;;  %p1282_p13 = scmp.lt.s32.totalorder %s1280_s10, %s1273_s7 }
  0x36   : > { %p1277_p9 = pneg %p1276_p6  ;;  %p1283_p4 = por %p1282_p13, %p1281_p11 }
  0x38   : > { %p1284_p8 = pnand %p1283_p4, %p1277_p9 }
  0x3a   : > { %1287 = shalt.err (!%p1284_p8)
}
  0x3b   : > { %1166 = dma.hbm_to_vmem [thread:$0]  (!%p1499_p5), %s1506_s17, 640, %s159_s22, %s147_s24  }
  0x3c   : > { %p1851_p7 = scmp.ne.s32.totalorder %s1845_s20, 0 }
  0x3d   : > { %s1525_s11 = sand.u32 (!%p1851_p7), 1, %s1348_s13   ;;  %p1852_p6 = scmp.ne.s32.totalorder (!%p1851_p7), %s1843_s18, 0 }
  0x3e   : > { %167 = sbr.rel (%p1851_p7) target bundleno = 646 (0x286), region = 32  ;;  %s170_s25 = scalar_lea.sflag (!%p1851_p7), [#allocation4], %s1525_s11 }
  0x3f   : > { %s1150_s21 = smul.u32 (!%p1851_p7), 40, %s1525_s11 }
  0x41   : > { %s173_s26 = scalar_lea.vmem (!%p1851_p7), [#allocation3], %s1150_s21 }
  0x43   : > { %1331 = dma.done.wait (%p1852_p6), %s170_s25, 640  }
  0x44   : > { %1333 = vsyncadd (%p1852_p6), %s170_s25, 4294966656  ;;  %p1853_p4 = scmp.eq.s32.totalorder %s1427_s16, 0 }
  0x46   : > { %1335 = dma.done.wait (%p1853_p4), [#allocation7], 256   ;;  %p1854_p8 = pmov %p1853_p4 }
  0x47   : > { %v1537_v0 = vld [vmem:[%s173_s26 + $0x10] sm:$0xff]  ;;  %v1539_v1 = vld [vmem:[%s173_s26 + $0x8] sm:$0xff]  ;;  %v1541_v2 = vld [vmem:[%s173_s26 + $0x18] sm:$0xff]  ;;  %s1360_s20 = smov 46   ;;  %s1361_s18 = smov 47   ;;  %vm748_vm0 = vcmask 375808  }
  0x48   : > { %1337 = vsyncadd (%p1854_p8), [#allocation7], 4294967040  ;;  %742 = vrot.lane.b32.xlu1 %v1537_v0, %s1360_s20  ;;  %424 = vst [vmem:[#allocation2 + $0x190] sm:$0xf0] %v1537_v0  ;;  %740 = vrot.lane.b32.xlu0 %v1539_v1, %s1360_s20  ;;  %v1548_v3 = vrot.slane %v1541_v2, 4  ;;  %v1552_v4 = vrot.slane %v1539_v1, 4 }
  0x49   : > { %423 = vst [vmem:[#allocation2] sm:$0xf0] %v1539_v1  ;;  %425 = vst [vmem:[#allocation2 + $0x1a0] sm:$0xf0] %v1541_v2  ;;  %v1554_v5 = vld [vmem:[%s173_s26] sm:$0xff]  ;;  %v1565_v8 = vrot.slane %v1537_v0, 4 }
  0x4a   : > { %v1556_v6 = vld [vmem:[%s173_s26 + $0x20] sm:$0xff]  ;;  %422 = vst [vmem:[#allocation2 + $0x208] sm:$0xf0] %v1554_v5  ;;  %v1572_v9 = vrot.slane %v1554_v5, 4  ;;  %s1362_s9 = smov 64   ;;  %s1363_s17 = smov 48  }
  0x4b   : > { %v1562_v7 = vrot.slane %v1556_v6, 4  ;;  %s1364_s22 = smov 66   ;;  %s1365_s24 = smov 65   ;;  %vm725_vm1 = vcmask 384000   ;;  %vm679_vm2 = vcmask 523264   ;;  %vm702_vm3 = vcmask 392192  }
  0x4c   : > { %721 = vrot.lane.b32.xlu1 %v1548_v3, %s1361_s18  ;;  %717 = vrot.lane.b32.xlu0 %v1552_v4, %s1361_s18  ;;  %s1366_s27 = smov 67   ;;  %s1367_s28 = smov 68   ;;  %vm386_vm4 = vcmask 539648   ;;  %vm409_vm5 = vcmask 531456   ;;  %vm363_vm6 = vcmask 547840   ;;  %vm644_vm7 = vcmask 556032  }
  0x4d   : > { %s1368_s29 = smov 85   ;;  %s1369_s30 = smov 84   ;;  %vm340_vm8 = vcmask 695296   ;;  %vm621_vm9 = vcmask 687104   ;;  %vm294_vm10 = vcmask 711680   ;;  %vm317_vm11 = vcmask 703488  }
  0x4e   : > { %s1370_s7 = smov 87   ;;  %s1371_s6 = smov 86   ;;  %vm883_vm12 = vcmask 64512   ;;  %vm563_vm13 = vcmask 850944   ;;  %vm586_vm14 = vcmask 719872   ;;  %vm248_vm15 = vcmask 867328  }
  0x4f   : > { %s1372_s8 = smov 104   ;;  %s1373_s10 = smov 88  }
  0x50   : > { %723 = vrot.lane.b32.xlu1 %v1562_v7, %s1361_s18  ;;  %719 = vrot.lane.b32.xlu0 %v1565_v8, %s1361_s18  ;;  %s1374_s21 = smov 106   ;;  %s1375_s25 = smov 105  }
  0x51   : > { %s1376_s26 = smov 107   ;;  %p1855_p5 = scmp.ne.s32.totalorder %s1849_s5, 0 }
  0x54   : > { %746 = vrot.lane.b32.xlu1 %v1556_v6, %s1360_s20  ;;  %744 = vrot.lane.b32.xlu0 %v1541_v2, %s1360_s20 }
  0x58   : > { %738 = vrot.lane.b32.xlu1 %v1554_v5, %s1360_s20  ;;  %715 = vrot.lane.b32.xlu0 %v1572_v9, %s1361_s18  ;;  %s1377_s20 = smov 108   ;;  %s1378_s18 = smov 125  }
  0x5c   : > { %673 = vrot.lane.b32.xlu1 %v1565_v8, %s1362_s9  ;;  %671 = vrot.lane.b32.xlu0 %v1552_v4, %s1362_s9 }
  0x60   : > { %677 = vrot.lane.b32.xlu1 %v1562_v7, %s1362_s9  ;;  %675 = vrot.lane.b32.xlu0 %v1548_v3, %s1362_s9 }
  0x64   : > { %696 = vrot.lane.b32.xlu1 %v1537_v0, %s1363_s17  ;;  %694 = vrot.lane.b32.xlu0 %v1539_v1, %s1363_s17 }
  0x68   : > { %700 = vrot.lane.b32.xlu1 %v1556_v6, %s1363_s17  ;;  %698 = vrot.lane.b32.xlu0 %v1541_v2, %s1363_s17 }
  0x6c   : > { %692 = vrot.lane.b32.xlu1 %v1554_v5, %s1363_s17  ;;  %669 = vrot.lane.b32.xlu0 %v1572_v9, %s1362_s9  ;;  %s1379_s9 = smov 124   ;;  %s1380_s17 = smov 127  }
  0x70   : > { %380 = vrot.lane.b32.xlu1 %v1565_v8, %s1364_s22  ;;  %378 = vrot.lane.b32.xlu0 %v1552_v4, %s1364_s22 }
  0x74   : > { %384 = vrot.lane.b32.xlu1 %v1562_v7, %s1364_s22  ;;  %382 = vrot.lane.b32.xlu0 %v1548_v3, %s1364_s22 }
  0x78   : > { %403 = vrot.lane.b32.xlu1 %v1537_v0, %s1365_s24  ;;  %401 = vrot.lane.b32.xlu0 %v1539_v1, %s1365_s24 }
  0x7c   : > { %407 = vrot.lane.b32.xlu1 %v1556_v6, %s1365_s24  ;;  %405 = vrot.lane.b32.xlu0 %v1541_v2, %s1365_s24 }
  0x80   : > { %399 = vrot.lane.b32.xlu1 %v1554_v5, %s1365_s24  ;;  %376 = vrot.lane.b32.xlu0 %v1572_v9, %s1364_s22  ;;  %s1381_s22 = smov 126   ;;  %s1382_s24 = smov 45  }
  0x84   : > { %357 = vrot.lane.b32.xlu1 %v1537_v0, %s1366_s27  ;;  %355 = vrot.lane.b32.xlu0 %v1539_v1, %s1366_s27 }
  0x88   : > { %361 = vrot.lane.b32.xlu1 %v1556_v6, %s1366_s27  ;;  %359 = vrot.lane.b32.xlu0 %v1541_v2, %s1366_s27 }
  0x8c   : > { %638 = vrot.lane.b32.xlu1 %v1565_v8, %s1367_s28  ;;  %636 = vrot.lane.b32.xlu0 %v1552_v4, %s1367_s28 }
  0x90   : > { %642 = vrot.lane.b32.xlu1 %v1562_v7, %s1367_s28  ;;  %640 = vrot.lane.b32.xlu0 %v1548_v3, %s1367_s28 }
  0x94   : > { %634 = vrot.lane.b32.xlu1 %v1572_v9, %s1367_s28  ;;  %353 = vrot.lane.b32.xlu0 %v1554_v5, %s1366_s27  ;;  %s1383_s27 = smov 44  }
  0x98   : > { %334 = vrot.lane.b32.xlu1 %v1565_v8, %s1368_s29  ;;  %332 = vrot.lane.b32.xlu0 %v1552_v4, %s1368_s29 }
  0x9c   : > { %338 = vrot.lane.b32.xlu1 %v1562_v7, %s1368_s29  ;;  %336 = vrot.lane.b32.xlu0 %v1548_v3, %s1368_s29 }
  0xa0   : > { %615 = vrot.lane.b32.xlu1 %v1537_v0, %s1369_s30  ;;  %613 = vrot.lane.b32.xlu0 %v1539_v1, %s1369_s30 }
  0xa4   : > { %619 = vrot.lane.b32.xlu1 %v1556_v6, %s1369_s30  ;;  %617 = vrot.lane.b32.xlu0 %v1541_v2, %s1369_s30 }
  0xa8   : > { %611 = vrot.lane.b32.xlu1 %v1554_v5, %s1369_s30  ;;  %330 = vrot.lane.b32.xlu0 %v1572_v9, %s1368_s29  ;;  %s1139_s30 = sshll.u32 %s1525_s11, 5 }
  0xac   : > { %288 = vrot.lane.b32.xlu1 %v1565_v8, %s1370_s7  ;;  %286 = vrot.lane.b32.xlu0 %v1552_v4, %s1370_s7 }
  0xb0   : > { %292 = vrot.lane.b32.xlu1 %v1562_v7, %s1370_s7  ;;  %290 = vrot.lane.b32.xlu0 %v1548_v3, %s1370_s7 }
  0xb4   : > { %311 = vrot.lane.b32.xlu1 %v1537_v0, %s1371_s6  ;;  %309 = vrot.lane.b32.xlu0 %v1539_v1, %s1371_s6 }
  0xb8   : > { %315 = vrot.lane.b32.xlu1 %v1556_v6, %s1371_s6  ;;  %313 = vrot.lane.b32.xlu0 %v1541_v2, %s1371_s6 }
  0xba   : > { %v743_v10 = vpop.permute.xlu1 %742  ;;  %v741_v11 = vpop.permute.xlu0 %740 }
  0xbb   : > { %v750_v12 = vsel %vm748_vm0, %v741_v11, %v743_v10 }
  0xbc   : > { %758 = vst [vmem:[#allocation2 + $0x170] sm:$0xf0] %v750_v12  ;;  %307 = vrot.lane.b32.xlu1 %v1554_v5, %s1371_s6  ;;  %284 = vrot.lane.b32.xlu0 %v1572_v9, %s1370_s7  ;;  %s199_s7 = scalar_lea.vmem [#allocation8], %s1139_s30  ;;  %s1147_s6 = sshll.u32 %s1427_s16, 9 }
  0xbe   : > { %v722_v13 = vpop.permute.xlu1 %721  ;;  %v718_v14 = vpop.permute.xlu0 %717 }
  0xc0   : > { %557 = vrot.lane.b32.xlu1 %v1565_v8, %s1372_s8  ;;  %555 = vrot.lane.b32.xlu0 %v1552_v4, %s1372_s8 }
  0xc2   : > { %v724_v15 = vpop.permute.xlu1 %723  ;;  %v720_v16 = vpop.permute.xlu0 %719 }
  0xc3   : > { %v729_v17 = vsel %vm725_vm1, %v722_v13, %v724_v15  ;;  %v727_v18 = vsel %vm725_vm1, %v718_v14, %v720_v16  ;;  %v728_v19 = vsel %vm725_vm1, %v720_v16, %v722_v13 }
  0xc4   : > { %737 = vst [vmem:[#allocation2 + $0x90] sm:$0xf] %v729_v17  ;;  %735 = vst [vmem:[#allocation2 + $0x170] sm:$0xf] %v727_v18  ;;  %561 = vrot.lane.b32.xlu1 %v1562_v7, %s1372_s8  ;;  %559 = vrot.lane.b32.xlu0 %v1548_v3, %s1372_s8 }
  0xc5   : > { %736 = vst [vmem:[#allocation2 + $0x128] sm:$0xf] %v728_v19 }
  0xc6   : > { %v747_v20 = vpop.permute.xlu1 %746  ;;  %v745_v21 = vpop.permute.xlu0 %744 }
  0xc7   : > { %v751_v22 = vsel %vm748_vm0, %v743_v10, %v745_v21  ;;  %v752_v23 = vsel %vm748_vm0, %v745_v21, %v747_v20 }
  0xc8   : > { %759 = vst [vmem:[#allocation2 + $0x128] sm:$0xf0] %v751_v22  ;;  %760 = vst [vmem:[#allocation2 + $0x90] sm:$0xf0] %v752_v23  ;;  %580 = vrot.lane.b32.xlu1 %v1537_v0, %s1373_s10  ;;  %578 = vrot.lane.b32.xlu0 %v1539_v1, %s1373_s10 }
  0xca   : > { %v739_v24 = vpop.permute.xlu1 %738  ;;  %v716_v25 = vpop.permute.xlu0 %715 }
  0xcb   : > { %v749_v26 = vsel %vm748_vm0, %v739_v24, %v741_v11  ;;  %v726_v27 = vsel %vm725_vm1, %v716_v25, %v718_v14  ;;  %v870_v28 = vld [vmem:[#allocation2 + $0x170] sm:$0xff]  ;;  %vm271_vm0 = vcmask 859136   ;;  %vm220_vm1 = vcmask 875520  }
  0xcc   : > { %757 = vst [vmem:[#allocation2 + $0x210] sm:$0xf0] %v749_v26  ;;  %734 = vst [vmem:[#allocation2 + $0x210] sm:$0xf] %v726_v27  ;;  %887 = vmatprep.subr.mxu0 %v870_v28  ;;  %584 = vrot.lane.b32.xlu1 %v1556_v6, %s1373_s10 }
  0xcd   : > { %582 = vrot.lane.b32.xlu0 %v1541_v2, %s1373_s10 }
  0xce   : > { %v674_v29 = vpop.permute.xlu1 %673  ;;  %v672_v30 = vpop.permute.xlu0 %671 }
  0xcf   : > { %v681_v31 = vsel %vm679_vm2, %v672_v30, %v674_v29  ;;  %v872_v32 = vld [vmem:[#allocation2 + $0x90] sm:$0xff]  ;;  %v871_v33 = vld [vmem:[#allocation2 + $0x128] sm:$0xff] }
  0xd0   : > { %689 = vst [vmem:[#allocation2 + $0x1e8] sm:$0xf] %v681_v31  ;;  %958 = vmatprep.subr.mxu1 %v872_v32  ;;  %576 = vrot.lane.b32.xlu1 %v1554_v5, %s1373_s10 }
  0xd1   : > { %553 = vrot.lane.b32.xlu0 %v1572_v9, %s1372_s8  ;;  %959 = vmatpush1.msra.mxu1 %v871_v33  ;;  %s1052_s8 = sshll.u32 %s199_s7, 4  ;;  %s1053_s8 = int_to_ptr.vmem [resolvable:$true] %s1052_s8 }
  0xd2   : > { %v678_v34 = vpop.permute.xlu1 %677  ;;  %v676_v35 = vpop.permute.xlu0 %675 }
  0xd3   : > { %v682_v36 = vsel %vm679_vm2, %v674_v29, %v676_v35  ;;  %v683_v37 = vsel %vm679_vm2, %v676_v35, %v678_v34  ;;  %v869_v38 = vld [vmem:[#allocation2 + $0x210] sm:$0xff] }
  0xd4   : > { %690 = vst [vmem:[#allocation2 + $0x18] sm:$0xf] %v682_v36  ;;  %691 = vst [vmem:[#allocation2 + $0xb8] sm:$0xf] %v683_v37  ;;  %242 = vrot.lane.b32.xlu1 %v1565_v8, %s1374_s21  ;;  %888 = vmatpush1.msra.mxu0 %v869_v38 }
  0xd5   : > { %240 = vrot.lane.b32.xlu0 %v1552_v4, %s1374_s21 }
  0xd6   : > { %v697_v39 = vpop.permute.xlu1 %696  ;;  %v695_v40 = vpop.permute.xlu0 %694 }
  0xd7   : > { %v704_v41 = vsel %vm702_vm3, %v695_v40, %v697_v39 }
  0xd8   : > { %712 = vst [vmem:[#allocation2 + $0x1e8] sm:$0xf0] %v704_v41  ;;  %246 = vrot.lane.b32.xlu1 %v1562_v7, %s1374_s21 }
  0xd9   : > { %244 = vrot.lane.b32.xlu0 %v1548_v3, %s1374_s21 }
  0xda   : > { %v701_v42 = vpop.permute.xlu1 %700  ;;  %v699_v43 = vpop.permute.xlu0 %698 }
  0xdb   : > { %v705_v44 = vsel %vm702_vm3, %v697_v39, %v699_v43  ;;  %v706_v45 = vsel %vm702_vm3, %v699_v43, %v701_v42 }
  0xdc   : > { %713 = vst [vmem:[#allocation2 + $0x18] sm:$0xf0] %v705_v44  ;;  %714 = vst [vmem:[#allocation2 + $0xb8] sm:$0xf0] %v706_v45  ;;  %265 = vrot.lane.b32.xlu1 %v1537_v0, %s1375_s25 }
  0xdd   : > { %263 = vrot.lane.b32.xlu0 %v1539_v1, %s1375_s25 }
  0xde   : > { %v693_v46 = vpop.permute.xlu1 %692  ;;  %v670_v47 = vpop.permute.xlu0 %669 }
  0xdf   : > { %v703_v48 = vsel %vm702_vm3, %v693_v46, %v695_v40  ;;  %v680_v49 = vsel %vm679_vm2, %v670_v47, %v672_v30  ;;  %v866_v50 = vld [vmem:[#allocation2 + $0x1e8] sm:$0xff]  ;;  %vm528_vm2 = vcmask 883712   ;;  %vm482_vm3 = vcmask 1022976  }
  0xe0   : > { %711 = vst [vmem:[#allocation2 + $0x20] sm:$0xf0] %v703_v48  ;;  %688 = vst [vmem:[#allocation2 + $0x20] sm:$0xf] %v680_v49  ;;  %269 = vrot.lane.b32.xlu1 %v1556_v6, %s1375_s25  ;;  %889 = vmatprep.subr.mxu0 %v866_v50 }
  0xe1   : > { %267 = vrot.lane.b32.xlu0 %v1541_v2, %s1375_s25 }
  0xe2   : > { %v381_v51 = vpop.permute.xlu1 %380  ;;  %v379_v52 = vpop.permute.xlu0 %378 }
  0xe3   : > { %v388_v53 = vsel %vm386_vm4, %v379_v52, %v381_v51  ;;  %v868_v54 = vld [vmem:[#allocation2 + $0xb8] sm:$0xff] }
  0xe4   : > { %v867_v55 = vld [vmem:[#allocation2 + $0x18] sm:$0xff]  ;;  %396 = vst [vmem:[#allocation2 + $0x200] ss:$-148 sps:$4 sm:$0xff] %v388_v53   ;;  %261 = vrot.lane.b32.xlu1 %v1554_v5, %s1375_s25  ;;  %960 = vmatprep.subr.mxu1 %v868_v54  ;;  %s1050_s25 = scalar_lea.hbm %s1838_s3, %s1147_s6 }
  0xe5   : > { %238 = vrot.lane.b32.xlu0 %v1572_v9, %s1374_s21  ;;  %961 = vmatpush1.msra.mxu1 %v867_v55 }
  0xe6   : > { %v385_v56 = vpop.permute.xlu1 %384  ;;  %v383_v57 = vpop.permute.xlu0 %382 }
  0xe7   : > { %v389_v58 = vsel %vm386_vm4, %v381_v51, %v383_v57  ;;  %v390_v59 = vsel %vm386_vm4, %v383_v57, %v385_v56  ;;  %v865_v60 = vld [vmem:[#allocation2 + $0x20] sm:$0xff] }
  0xe8   : > { %397 = vst [vmem:[#allocation2 + $0x158] ss:$-60 sps:$4 sm:$0xff] %v389_v58   ;;  %398 = vst [vmem:[#allocation2 + $0xb0] ss:$116 sps:$4 sm:$0xff] %v390_v59   ;;  %214 = vrot.lane.b32.xlu1 %v1537_v0, %s1376_s26  ;;  %890 = vmatpush1.msra.mxu0 %v865_v60 }
  0xe9   : > { %212 = vrot.lane.b32.xlu0 %v1539_v1, %s1376_s26 }
  0xea   : > { %v404_v61 = vpop.permute.xlu1 %403  ;;  %v402_v62 = vpop.permute.xlu0 %401 }
  0xeb   : > { %v411_v63 = vsel %vm409_vm5, %v402_v62, %v404_v61 }
  0xec   : > { %419 = vst [vmem:[#allocation2] ss:$516 sps:$4 sm:$0xff] %v411_v63   ;;  %218 = vrot.lane.b32.xlu1 %v1556_v6, %s1376_s26 }
  0xed   : > { %216 = vrot.lane.b32.xlu0 %v1541_v2, %s1376_s26 }
  0xee   : > { %v408_v10 = vpop.permute.xlu1 %407  ;;  %v406_v11 = vpop.permute.xlu0 %405 }
  0xef   : > { %v412_v12 = vsel %vm409_vm5, %v404_v61, %v406_v11  ;;  %v413_v13 = vsel %vm409_vm5, %v406_v11, %v408_v10 }
  0xf0   : > { %420 = vst [vmem:[#allocation2 + $0x190] ss:$-52 sps:$4 sm:$0xff] %v412_v12   ;;  %421 = vst [vmem:[#allocation2 + $0x1a0] ss:$-236 sps:$4 sm:$0xff] %v413_v13   ;;  %522 = vrot.lane.b32.xlu1 %v1565_v8, %s1377_s20 }
  0xf1   : > { %520 = vrot.lane.b32.xlu0 %v1552_v4, %s1377_s20 }
  0xf2   : > { %v400_v14 = vpop.permute.xlu1 %399  ;;  %v377_v15 = vpop.permute.xlu0 %376 }
  0xf3   : > { %v410_v16 = vsel %vm409_vm5, %v400_v14, %v402_v62  ;;  %v387_v17 = vsel %vm386_vm4, %v377_v15, %v379_v52  ;;  %v862_v18 = vld [vmem:[#allocation2 + $0x200] sm:$0xff]  ;;  %vm505_vm4 = vcmask 1014784   ;;  %vm436_vm5 = vcmask 1039360  }
  0xf4   : > { %418 = vst [vmem:[#allocation2 + $0x208] ss:$-388 sps:$4 sm:$0xff] %v410_v16   ;;  %395 = vst [vmem:[#allocation2 + $0x80] ss:$68 sps:$4 sm:$0xff] %v387_v17   ;;  %526 = vrot.lane.b32.xlu1 %v1562_v7, %s1377_s20  ;;  %891 = vmatprep.subr.mxu0 %v862_v18 }
  0xf5   : > { %524 = vrot.lane.b32.xlu0 %v1548_v3, %s1377_s20 }
  0xf6   : > { %v358_v19 = vpop.permute.xlu1 %357  ;;  %v356_v20 = vpop.permute.xlu0 %355 }
  0xf7   : > { %v365_v21 = vsel %vm363_vm6, %v356_v20, %v358_v19  ;;  %v864_v22 = vld [vmem:[#allocation2 + $0xb0] sm:$0xff]  ;;  %v863_v23 = vld [vmem:[#allocation2 + $0x158] sm:$0xff] }
  0xf8   : > { %373 = vst [vmem:[#allocation2 + $0x168] ss:$20 sps:$4 sm:$0xff] %v365_v21   ;;  %518 = vrot.lane.b32.xlu1 %v1572_v9, %s1377_s20  ;;  %962 = vmatprep.subr.mxu1 %v864_v22  ;;  %s1288_s20 = scalar_lea.vmem %s1053_s8, 512 }
  0xf9   : > { %210 = vrot.lane.b32.xlu0 %v1554_v5, %s1376_s26  ;;  %963 = vmatpush1.msra.mxu1 %v863_v23  ;;  %s1038_s26 = scalar_lea.sflag [#allocation5], %s1525_s11  ;;  %p1289_p9 = scmp.ne.s32.totalorder %s1053_s8, %s1288_s20 }
  0xfa   : > { %v362_v24 = vpop.permute.xlu1 %361  ;;  %v360_v25 = vpop.permute.xlu0 %359 }
  0xfb   : > { %v366_v26 = vsel %vm363_vm6, %v358_v19, %v360_v25  ;;  %v367_v27 = vsel %vm363_vm6, %v360_v25, %v362_v24  ;;  %v861_v28 = vld [vmem:[#allocation2 + $0x80] sm:$0xff]  ;;  %p1290_p12 = pnand %p1289_p9, %p1855_p5 }
  0xfc   : > { %374 = vst [vmem:[#allocation2 + $0x118] ss:$44 sps:$4 sm:$0xff] %v366_v26   ;;  %375 = vst [vmem:[#allocation2 + $0x120] ss:$-12 sps:$4 sm:$0xff] %v367_v27   ;;  %476 = vrot.lane.b32.xlu1 %v1565_v8, %s1378_s18  ;;  %892 = vmatpush1.msra.mxu0 %v861_v28  ;;  %v808_v26 = vld [vmem:[#allocation6 + $0x8] sm:$0xff] }
  0xfd   : > { %474 = vrot.lane.b32.xlu0 %v1552_v4, %s1378_s18  ;;  %1141 = vmatprep.mubr.msk.f32.mxu1 %vm883_vm12, %v808_v26  ;;  %p1291_p10 = pneg %p1290_p12 }
  0xfe   : > { %v639_v29 = vpop.permute.xlu1 %638  ;;  %v637_v30 = vpop.permute.xlu0 %636  ;;  %1140 = vmatprep.mubr.msk.f32.mxu0 %vm883_vm12, %v808_v26 }
  0xff   : > { %v646_v31 = vsel %vm644_vm7, %v637_v30, %v639_v29 }
 0x100   : > { %654 = vst [vmem:[#allocation2 + $0x178] sm:$0xf] %v646_v31  ;;  %480 = vrot.lane.b32.xlu1 %v1562_v7, %s1378_s18  ;;  %v1384_v31 = vmov 0  }
 0x101   : > { %478 = vrot.lane.b32.xlu0 %v1548_v3, %s1378_s18 }
 0x102   : > { %v643_v32 = vpop.permute.xlu1 %642  ;;  %v641_v33 = vpop.permute.xlu0 %640  ;;  %1233 = vset.pattern.permute.xlu0 %v1384_v31 }
 0x103   : > { %v647_v34 = vsel %vm644_vm7, %v639_v29, %v641_v33  ;;  %v648_v35 = vsel %vm644_vm7, %v641_v33, %v643_v32 }
 0x104   : > { %655 = vst [vmem:[#allocation2 + $0x140] sm:$0xf] %v647_v34  ;;  %656 = vst [vmem:[#allocation2 + $0x110] sm:$0xf] %v648_v35  ;;  %499 = vrot.lane.b32.xlu1 %v1537_v0, %s1379_s9 }
 0x105   : > { %497 = vrot.lane.b32.xlu0 %v1539_v1, %s1379_s9 }
 0x106   : > { %v635_v36 = vpop.permute.xlu1 %634  ;;  %v354_v37 = vpop.permute.xlu0 %353 }
 0x107   : > { %v645_v38 = vsel %vm644_vm7, %v635_v36, %v637_v30  ;;  %v364_v39 = vsel %vm363_vm6, %v354_v37, %v356_v20  ;;  %v858_v40 = vld [vmem:[#allocation2 + $0x178] sm:$0xff]  ;;  %vm459_vm6 = vcmask 1031168   ;;  %vm771_vm7 = vcmask 367616  }
 0x108   : > { %653 = vst [vmem:[#allocation2 + $0x38] sm:$0xf] %v645_v38  ;;  %372 = vst [vmem:[#allocation2 + $0xc0] ss:$-132 sps:$4 sm:$0xff] %v364_v39   ;;  %503 = vrot.lane.b32.xlu1 %v1556_v6, %s1379_s9  ;;  %893 = vmatprep.subr.mxu0 %v858_v40 }
 0x109   : > { %501 = vrot.lane.b32.xlu0 %v1541_v2, %s1379_s9 }
 0x10a   : > { %v335_v41 = vpop.permute.xlu1 %334  ;;  %v333_v42 = vpop.permute.xlu0 %332 }
 0x10b   : > { %v342_v43 = vsel %vm340_vm8, %v333_v42, %v335_v41  ;;  %v860_v44 = vld [vmem:[#allocation2 + $0x110] sm:$0xff]  ;;  %v859_v45 = vld [vmem:[#allocation2 + $0x140] sm:$0xff] }
 0x10c   : > { %350 = vst [vmem:[#allocation2 + $0x218] ss:$-228 sps:$4 sm:$0xff] %v342_v43   ;;  %495 = vrot.lane.b32.xlu1 %v1554_v5, %s1379_s9  ;;  %964 = vmatprep.subr.mxu1 %v860_v44 }
 0x10d   : > { %472 = vrot.lane.b32.xlu0 %v1572_v9, %s1378_s18  ;;  %965 = vmatpush1.msra.mxu1 %v859_v45  ;;  %s1385_s18 = smov [#allocation8]  }
 0x10e   : > { %v339_v46 = vpop.permute.xlu1 %338  ;;  %v337_v47 = vpop.permute.xlu0 %336  ;;  %s1292_s16 = sshll.u32 %s1385_s18, 4  ;;  %s1293_s16 = int_to_ptr.vmem [resolvable:$false] %s1292_s16 }
 0x10f   : > { %v343_v48 = vsel %vm340_vm8, %v335_v41, %v337_v47  ;;  %v344_v49 = vsel %vm340_vm8, %v337_v47, %v339_v46  ;;  %v857_v50 = vld [vmem:[#allocation2 + $0x38] sm:$0xff]  ;;  %s1294_s9 = scalar_lea.vmem %s1293_s16, 1024  ;;  %p1295_p1 = scmp.lt.s32.totalorder %s1053_s8, %s1293_s16 }
 0x110   : > { %351 = vst [vmem:[#allocation2 + $0x68] ss:$132 sps:$4 sm:$0xff] %v343_v48   ;;  %352 = vst [vmem:[#allocation2 + $0x30] ss:$-28 sps:$4 sm:$0xff] %v344_v49   ;;  %430 = vrot.lane.b32.xlu1 %v1565_v8, %s1380_s17  ;;  %894 = vmatpush1.msra.mxu0 %v857_v50  ;;  %p1296_p2 = scmp.lt.s32.totalorder %s1294_s9, %s1288_s20 }
 0x111   : > { %428 = vrot.lane.b32.xlu0 %v1552_v4, %s1380_s17 }
 0x112   : > { %v616_v51 = vpop.permute.xlu1 %615  ;;  %v614_v52 = vpop.permute.xlu0 %613  ;;  %p1297_p0 = por %p1296_p2, %p1295_p1 }
 0x113   : > { %v623_v53 = vsel %vm621_vm9, %v614_v52, %v616_v51 }
 0x114   : > { %631 = vst [vmem:[#allocation2 + $0x218] sm:$0xf0] %v623_v53  ;;  %434 = vrot.lane.b32.xlu1 %v1562_v7, %s1380_s17  ;;  %p1298_p3 = pnand %p1297_p0, %p1291_p10 }
 0x115   : > { %432 = vrot.lane.b32.xlu0 %v1548_v3, %s1380_s17 }
 0x116   : > { %v620_v54 = vpop.permute.xlu1 %619  ;;  %v618_v55 = vpop.permute.xlu0 %617 }
 0x117   : > { %v624_v56 = vsel %vm621_vm9, %v616_v51, %v618_v55  ;;  %v625_v57 = vsel %vm621_vm9, %v618_v55, %v620_v54 }
 0x118   : > { %632 = vst [vmem:[#allocation2 + $0x68] sm:$0xf0] %v624_v56  ;;  %633 = vst [vmem:[#allocation2 + $0x30] sm:$0xf0] %v625_v57  ;;  %453 = vrot.lane.b32.xlu1 %v1537_v0, %s1381_s22 }
 0x119   : > { %451 = vrot.lane.b32.xlu0 %v1539_v1, %s1381_s22 }
 0x11a   : > { %v612_v58 = vpop.permute.xlu1 %611  ;;  %v331_v59 = vpop.permute.xlu0 %330 }
 0x11b   : > { %v622_v60 = vsel %vm621_vm9, %v612_v58, %v614_v52  ;;  %v341_v61 = vsel %vm340_vm8, %v331_v59, %v333_v42  ;;  %v854_v62 = vld [vmem:[#allocation2 + $0x218] sm:$0xff]  ;;  %vm794_vm8 = vcmask 359424  }
 0x11c   : > { %630 = vst [vmem:[#allocation2 + $0x1f8] sm:$0xf0] %v622_v60  ;;  %349 = vst [vmem:[#allocation2 + $0x1f8] ss:$-244 sps:$4 sm:$0xff] %v341_v61   ;;  %457 = vrot.lane.b32.xlu1 %v1556_v6, %s1381_s22  ;;  %895 = vmatprep.subr.mxu0 %v854_v62 }
 0x11d   : > { %455 = vrot.lane.b32.xlu0 %v1541_v2, %s1381_s22 }
 0x11e   : > { %v289_v63 = vpop.permute.xlu1 %288  ;;  %v287_v10 = vpop.permute.xlu0 %286 }
 0x11f   : > { %v296_v11 = vsel %vm294_vm10, %v287_v10, %v289_v63  ;;  %v856_v12 = vld [vmem:[#allocation2 + $0x30] sm:$0xff]  ;;  %v855_v13 = vld [vmem:[#allocation2 + $0x68] sm:$0xff] }
 0x120   : > { %304 = vst [vmem:[#allocation2 + $0x50] ss:$164 sps:$4 sm:$0xff] %v296_v11   ;;  %449 = vrot.lane.b32.xlu1 %v1554_v5, %s1381_s22  ;;  %966 = vmatprep.subr.mxu1 %v856_v12 }
 0x121   : > { %426 = vrot.lane.b32.xlu0 %v1572_v9, %s1380_s17  ;;  %967 = vmatpush1.msra.mxu1 %v855_v13 }
 0x122   : > { %v293_v14 = vpop.permute.xlu1 %292  ;;  %v291_v15 = vpop.permute.xlu0 %290 }
 0x123   : > { %v297_v16 = vsel %vm294_vm10, %v289_v63, %v291_v15  ;;  %v298_v17 = vsel %vm294_vm10, %v291_v15, %v293_v14  ;;  %v853_v18 = vld [vmem:[#allocation2 + $0x1f8] sm:$0xff] }
 0x124   : > { %305 = vst [vmem:[#allocation2 + $0x138] ss:$-60 sps:$4 sm:$0xff] %v297_v16   ;;  %306 = vst [vmem:[#allocation2 + $0x1d8] ss:$-348 sps:$4 sm:$0xff] %v298_v17   ;;  %765 = vrot.lane.b32.xlu1 %v1565_v8, %s1382_s24  ;;  %896 = vmatpush1.msra.mxu0 %v853_v18 }
 0x125   : > { %763 = vrot.lane.b32.xlu0 %v1552_v4, %s1382_s24 }
 0x126   : > { %v312_v19 = vpop.permute.xlu1 %311  ;;  %v310_v20 = vpop.permute.xlu0 %309 }
 0x127   : > { %v319_v21 = vsel %vm317_vm11, %v310_v20, %v312_v19 }
 0x128   : > { %327 = vst [vmem:[#allocation2 + $0x130] ss:$-220 sps:$4 sm:$0xff] %v319_v21   ;;  %769 = vrot.lane.b32.xlu1 %v1562_v7, %s1382_s24 }
 0x129   : > { %767 = vrot.lane.b32.xlu0 %v1548_v3, %s1382_s24 }
 0x12a   : > { %v316_v22 = vpop.permute.xlu1 %315  ;;  %v314_v23 = vpop.permute.xlu0 %313 }
 0x12b   : > { %v320_v8 = vsel %vm317_vm11, %v312_v19, %v314_v23  ;;  %v321_v24 = vsel %vm317_vm11, %v314_v23, %v316_v22 }
 0x12c   : > { %328 = vst [vmem:[#allocation2 + $0xe8] ss:$84 sps:$4 sm:$0xff] %v320_v8   ;;  %329 = vst [vmem:[#allocation2 + $0x10] ss:$460 sps:$4 sm:$0xff] %v321_v24   ;;  %788 = vrot.lane.b32.xlu1 %v1537_v0, %s1383_s27 }
 0x12d   : > { %786 = vrot.lane.b32.xlu0 %v1539_v1, %s1383_s27 }
 0x12e   : > { %v308_v4 = vpop.permute.xlu1 %307  ;;  %v285_v25 = vpop.permute.xlu0 %284 }
 0x12f   : > { %v318_v7 = vsel %vm317_vm11, %v308_v4, %v310_v20  ;;  %v295_v3 = vsel %vm294_vm10, %v285_v25, %v287_v10  ;;  %v850_v27 = vld [vmem:[#allocation2 + $0x50] sm:$0xff] }
 0x130   : > { %326 = vst [vmem:[#allocation2 + $0x100] ss:$172 sps:$4 sm:$0xff] %v318_v7   ;;  %303 = vst [vmem:[#allocation2 + $0x1a8] ss:$-68 sps:$4 sm:$0xff] %v295_v3   ;;  %792 = vrot.lane.b32.xlu1 %v1556_v6, %s1383_s27  ;;  %897 = vmatprep.subr.mxu0 %v850_v27 }
 0x131   : > { %790 = vrot.lane.b32.xlu0 %v1541_v2, %s1383_s27  ;;  %v877_v2 = vld [vmem:[%s1837_s2] sm:$0xff] }
 0x132   : > { %v558_v0 = vpop.permute.xlu1 %557  ;;  %v556_v1 = vpop.permute.xlu0 %555 }
 0x133   : > { %v565_v28 = vsel %vm563_vm13, %v556_v1, %v558_v0  ;;  %v852_v29 = vld [vmem:[#allocation2 + $0x1d8] sm:$0xff] }
 0x134   : > { %v851_v30 = vld [vmem:[#allocation2 + $0x138] sm:$0xff]  ;;  %573 = vst [vmem:[#allocation2 + $0xa0] sm:$0xf] %v565_v28  ;;  %784 = vrot.lane.b32.xlu1 %v1554_v5, %s1383_s27  ;;  %968 = vmatprep.subr.mxu1 %v852_v29 }
 0x135   : > { %761 = vrot.lane.b32.xlu0 %v1572_v9, %s1382_s24  ;;  %969 = vmatpush1.msra.mxu1 %v851_v30 }
 0x136   : > { %v562_v6 = vpop.permute.xlu1 %561  ;;  %v560_v32 = vpop.permute.xlu0 %559 }
 0x137   : > { %v566_v33 = vsel %vm563_vm13, %v558_v0, %v560_v32  ;;  %v567_v34 = vsel %vm563_vm13, %v560_v32, %v562_v6  ;;  %v849_v35 = vld [vmem:[#allocation2 + $0x1a8] sm:$0xff] }
 0x138   : > { %574 = vst [vmem:[#allocation2 + $0xd0] sm:$0xf] %v566_v33  ;;  %575 = vst [vmem:[#allocation2 + $0x88] sm:$0xf] %v567_v34  ;;  %898 = vmatpush1.msra.mxu0 %v849_v35 }
 0x139   : > { %880 = vperm.xlu0 %1233, %v877_v2  }
 0x13a   : > { %v581_v5 = vpop.permute.xlu1 %580  ;;  %v579_v36 = vpop.permute.xlu0 %578 }
 0x13b   : > { %v588_v9 = vsel %vm586_vm14, %v579_v36, %v581_v5 }
 0x13c   : > { %596 = vst [vmem:[#allocation2 + $0xa0] sm:$0xf0] %v588_v9 }
 0x13e   : > { %v585_v37 = vpop.permute.xlu1 %584 }
 0x13f   : > { %v583_v38 = vpop.permute.xlu0 %582 }
 0x140   : > { %v589_v39 = vsel %vm586_vm14, %v581_v5, %v583_v38  ;;  %v590_v40 = vsel %vm586_vm14, %v583_v38, %v585_v37 }
 0x141   : > { %597 = vst [vmem:[#allocation2 + $0xd0] sm:$0xf0] %v589_v39  ;;  %598 = vst [vmem:[#allocation2 + $0x88] sm:$0xf0] %v590_v40 }
 0x142   : > { %v577_v41 = vpop.permute.xlu1 %576 }
 0x143   : > { %v587_v42 = vsel %vm586_vm14, %v577_v41, %v579_v36  ;;  %v554_v43 = vpop.permute.xlu0 %553  ;;  %v846_v44 = vld [vmem:[#allocation2 + $0xa0] sm:$0xff] }
 0x144   : > { %595 = vst [vmem:[#allocation2 + $0x108] sm:$0xf0] %v587_v42  ;;  %v564_v45 = vsel %vm563_vm13, %v554_v43, %v556_v1  ;;  %899 = vmatprep.subr.mxu0 %v846_v44 }
 0x145   : > { %572 = vst [vmem:[#allocation2 + $0x108] sm:$0xf] %v564_v45 }
 0x146   : > { %v243_v46 = vpop.permute.xlu1 %242 }
 0x147   : > { %v241_v47 = vpop.permute.xlu0 %240 }
 0x148   : > { %v250_v48 = vsel %vm248_vm15, %v241_v47, %v243_v46  ;;  %v848_v49 = vld [vmem:[#allocation2 + $0x88] sm:$0xff]  ;;  %v847_v50 = vld [vmem:[#allocation2 + $0xd0] sm:$0xff] }
 0x149   : > { %258 = vst [vmem:[#allocation2 + $0x188] ss:$-380 sps:$4 sm:$0xff] %v250_v48   ;;  %970 = vmatprep.subr.mxu1 %v848_v49 }
 0x14a   : > { %971 = vmatpush1.msra.mxu1 %v847_v50  ;;  %v247_v51 = vpop.permute.xlu1 %246 }
 0x14b   : > { %v245_v52 = vpop.permute.xlu0 %244 }
 0x14c   : > { %v251_v53 = vsel %vm248_vm15, %v243_v46, %v245_v52  ;;  %v252_v54 = vsel %vm248_vm15, %v245_v52, %v247_v51  ;;  %v845_v55 = vld [vmem:[#allocation2 + $0x108] sm:$0xff] }
 0x14d   : > { %259 = vst [vmem:[#allocation2 + $0x58] ss:$-20 sps:$4 sm:$0xff] %v251_v53   ;;  %260 = vst [vmem:[#allocation2 + $0x1c0] ss:$-404 sps:$4 sm:$0xff] %v252_v54   ;;  %900 = vmatpush1.msra.mxu0 %v845_v55 }
 0x14e   : > { %v266_v56 = vpop.permute.xlu1 %265 }
 0x14f   : > { %v264_v57 = vpop.permute.xlu0 %263 }
 0x150   : > { %v273_v58 = vsel %vm271_vm0, %v264_v57, %v266_v56 }
 0x151   : > { %281 = vst [vmem:[#allocation2 + $0xf0] ss:$156 sps:$4 sm:$0xff] %v273_v58  }
 0x152   : > { %v270_v59 = vpop.permute.xlu1 %269 }
 0x153   : > { %v268_v60 = vpop.permute.xlu0 %267 }
 0x154   : > { %v274_v61 = vsel %vm271_vm0, %v266_v56, %v268_v60  ;;  %v275_v62 = vsel %vm271_vm0, %v268_v60, %v270_v59 }
 0x155   : > { %282 = vst [vmem:[#allocation2 + $0xf8] ss:$-156 sps:$4 sm:$0xff] %v274_v61   ;;  %283 = vst [vmem:[#allocation2 + $0x78] ss:$332 sps:$4 sm:$0xff] %v275_v62  }
 0x156   : > { %v262_v63 = vpop.permute.xlu1 %261 }
 0x157   : > { %v272_v10 = vsel %vm271_vm0, %v262_v63, %v264_v57  ;;  %v239_v11 = vpop.permute.xlu0 %238 }
 0x158   : > { %280 = vst [vmem:[#allocation2 + $0x160] ss:$-180 sps:$4 sm:$0xff] %v272_v10   ;;  %v249_v12 = vsel %vm248_vm15, %v239_v11, %v241_v47  ;;  %v842_v13 = vld [vmem:[#allocation2 + $0x188] sm:$0xff] }
 0x159   : > { %257 = vst [vmem:[#allocation2 + $0xa8] ss:$36 sps:$4 sm:$0xff] %v249_v12   ;;  %901 = vmatprep.subr.mxu0 %v842_v13 }
 0x15a   : > { %v215_v14 = vpop.permute.xlu1 %214 }
 0x15b   : > { %v213_v15 = vpop.permute.xlu0 %212 }
 0x15c   : > { %v222_v16 = vsel %vm220_vm1, %v213_v15, %v215_v14  ;;  %v844_v17 = vld [vmem:[#allocation2 + $0x1c0] sm:$0xff]  ;;  %v843_v18 = vld [vmem:[#allocation2 + $0x58] sm:$0xff] }
 0x15d   : > { %230 = vst [vmem:[#allocation2 + $0x8] ss:$68 sps:$4 sm:$0xff] %v222_v16   ;;  %972 = vmatprep.subr.mxu1 %v844_v17 }
 0x15e   : > { %973 = vmatpush1.msra.mxu1 %v843_v18  ;;  %v219_v19 = vpop.permute.xlu1 %218 }
 0x15f   : > { %v217_v20 = vpop.permute.xlu0 %216 }
 0x160   : > { %v223_v21 = vsel %vm220_vm1, %v215_v14, %v217_v20  ;;  %v224_v22 = vsel %vm220_vm1, %v217_v20, %v219_v19  ;;  %v841_v23 = vld [vmem:[#allocation2 + $0xa8] sm:$0xff] }
 0x161   : > { %231 = vst [vmem:[#allocation2 + $0x40] ss:$380 sps:$4 sm:$0xff] %v223_v21   ;;  %232 = vst [vmem:[#allocation2 + $0x28] ss:$460 sps:$4 sm:$0xff] %v224_v22   ;;  %902 = vmatpush1.msra.mxu0 %v841_v23  ;;  %v828_v22 = vld [vmem:[#allocation2 + $0x1a0] sm:$0xff] }
 0x162   : > { %v523_v8 = vpop.permute.xlu1 %522 }
 0x163   : > { %v521_v24 = vpop.permute.xlu0 %520 }
 0x164   : > { %v530_v4 = vsel %vm528_vm2, %v521_v24, %v523_v8 }
 0x165   : > { %538 = vst [vmem:[#allocation2 + $0x48] sm:$0xf] %v530_v4 }
 0x166   : > { %v527_v25 = vpop.permute.xlu1 %526 }
 0x167   : > { %v525_v26 = vpop.permute.xlu0 %524 }
 0x168   : > { %v531_v7 = vsel %vm528_vm2, %v523_v8, %v525_v26  ;;  %v532_v3 = vsel %vm528_vm2, %v525_v26, %v527_v25  ;;  %v827_v8 = vld [vmem:[#allocation2 + $0x190] sm:$0xff]  ;;  %v824_v26 = vld [vmem:[#allocation2 + $0x120] sm:$0xff] }
 0x169   : > { %539 = vst [vmem:[#allocation2 + $0x1b8] sm:$0xf] %v531_v7  ;;  %540 = vst [vmem:[#allocation2 + $0x1f0] sm:$0xf] %v532_v3  ;;  %v826_v7 = vld [vmem:[#allocation2] sm:$0xff]  ;;  %v823_v3 = vld [vmem:[#allocation2 + $0x118] sm:$0xff] }
 0x16a   : > { %v519_v27 = vpop.permute.xlu1 %518 }
 0x16b   : > { %v529_v0 = vsel %vm528_vm2, %v519_v27, %v521_v24  ;;  %v211_v1 = vpop.permute.xlu0 %210 }
 0x16c   : > { %537 = vst [vmem:[#allocation2 + $0x198] sm:$0xf] %v529_v0  ;;  %v221_v28 = vsel %vm220_vm1, %v211_v1, %v213_v15  ;;  %v838_v29 = vld [vmem:[#allocation2 + $0x48] sm:$0xff]  ;;  %v820_v1 = vld [vmem:[#allocation2 + $0x10] sm:$0xff] }
 0x16d   : > { %229 = vst [vmem:[#allocation2 + $0xc8] ss:$212 sps:$4 sm:$0xff] %v221_v28   ;;  %903 = vmatprep.subr.mxu0 %v838_v29  ;;  %v825_v0 = vld [vmem:[#allocation2 + $0x208] sm:$0xff] }
 0x16e   : > { %v477_v30 = vpop.permute.xlu1 %476  ;;  %v822_v29 = vld [vmem:[#allocation2 + $0x168] sm:$0xff] }
 0x16f   : > { %v475_v31 = vpop.permute.xlu0 %474 }
 0x170   : > { %v484_v6 = vsel %vm482_vm3, %v475_v31, %v477_v30  ;;  %v840_v32 = vld [vmem:[#allocation2 + $0x1f0] sm:$0xff]  ;;  %v839_v2 = vld [vmem:[#allocation2 + $0x1b8] sm:$0xff] }
 0x171   : > { %492 = vst [vmem:[#allocation2 + $0x1c8] sm:$0xf] %v484_v6  ;;  %974 = vmatprep.subr.mxu1 %v840_v32  ;;  %v821_v6 = vld [vmem:[#allocation2 + $0xc0] sm:$0xff]  ;;  %v816_v32 = vld [vmem:[#allocation2 + $0x78] sm:$0xff] }
 0x172   : > { %975 = vmatpush1.msra.mxu1 %v839_v2  ;;  %v481_v33 = vpop.permute.xlu1 %480  ;;  %v818_v2 = vld [vmem:[#allocation2 + $0x130] sm:$0xff] }
 0x173   : > { %v479_v34 = vpop.permute.xlu0 %478 }
 0x174   : > { %v485_v35 = vsel %vm482_vm3, %v477_v30, %v479_v34  ;;  %v486_v5 = vsel %vm482_vm3, %v479_v34, %v481_v33  ;;  %v837_v36 = vld [vmem:[#allocation2 + $0x198] sm:$0xff]  ;;  %v819_v30 = vld [vmem:[#allocation2 + $0xe8] sm:$0xff] }
 0x175   : > { %493 = vst [vmem:[#allocation2 + $0x98] sm:$0xf] %v485_v35  ;;  %494 = vst [vmem:[#allocation2 + $0xd8] sm:$0xf] %v486_v5  ;;  %904 = vmatpush1.msra.mxu0 %v837_v36  ;;  %v815_v33 = vld [vmem:[#allocation2 + $0xf8] sm:$0xff]  ;;  %v817_v35 = vld [vmem:[#allocation2 + $0x100] sm:$0xff] }
 0x176   : > { %v500_v9 = vpop.permute.xlu1 %499  ;;  %v812_v5 = vld [vmem:[#allocation2 + $0x28] sm:$0xff] }
 0x177   : > { %v498_v37 = vpop.permute.xlu0 %497 }
 0x178   : > { %v507_v38 = vsel %vm505_vm4, %v498_v37, %v500_v9 }
 0x179   : > { %515 = vst [vmem:[#allocation2 + $0x1c8] sm:$0xf0] %v507_v38 }
 0x17a   : > { %v504_v39 = vpop.permute.xlu1 %503 }
 0x17b   : > { %v502_v40 = vpop.permute.xlu0 %501 }
 0x17c   : > { %v508_v41 = vsel %vm505_vm4, %v500_v9, %v502_v40  ;;  %v509_v42 = vsel %vm505_vm4, %v502_v40, %v504_v39  ;;  %v814_v9 = vld [vmem:[#allocation2 + $0xf0] sm:$0xff]  ;;  %v813_v40 = vld [vmem:[#allocation2 + $0x160] sm:$0xff] }
 0x17d   : > { %516 = vst [vmem:[#allocation2 + $0x98] sm:$0xf0] %v508_v41  ;;  %517 = vst [vmem:[#allocation2 + $0xd8] sm:$0xf0] %v509_v42  ;;  %v810_v41 = vld [vmem:[#allocation2 + $0x8] sm:$0xff] }
 0x17e   : > { %v496_v43 = vpop.permute.xlu1 %495 }
 0x17f   : > { %v506_v44 = vsel %vm505_vm4, %v496_v43, %v498_v37  ;;  %v473_v45 = vpop.permute.xlu0 %472  ;;  %v811_v37 = vld [vmem:[#allocation2 + $0x40] sm:$0xff]  ;;  %v809_v43 = vld [vmem:[#allocation2 + $0xc8] sm:$0xff] }
 0x180   : > { %514 = vst [vmem:[#allocation2 + $0x70] sm:$0xf0] %v506_v44  ;;  %v483_v46 = vsel %vm482_vm3, %v473_v45, %v475_v31  ;;  %v834_v47 = vld [vmem:[#allocation2 + $0x1c8] sm:$0xff] }
 0x181   : > { %491 = vst [vmem:[#allocation2 + $0x70] sm:$0xf] %v483_v46  ;;  %905 = vmatprep.subr.mxu0 %v834_v47 }
 0x182   : > { %v431_v48 = vpop.permute.xlu1 %430 }
 0x183   : > { %v429_v49 = vpop.permute.xlu0 %428 }
 0x184   : > { %v438_v50 = vsel %vm436_vm5, %v429_v49, %v431_v48  ;;  %v836_v51 = vld [vmem:[#allocation2 + $0xd8] sm:$0xff] }
 0x185   : > { %v835_v52 = vld [vmem:[#allocation2 + $0x98] sm:$0xff]  ;;  %446 = vst [vmem:[#allocation2 + $0x1d0] sm:$0xf] %v438_v50  ;;  %976 = vmatprep.subr.mxu1 %v836_v51  ;;  %v807_v50 = vld [vmem:[#allocation6] sm:$0xff] }
 0x186   : > { %977 = vmatpush1.msra.mxu1 %v835_v52  ;;  %v435_v53 = vpop.permute.xlu1 %434 }
 0x187   : > { %v433_v54 = vpop.permute.xlu0 %432 }
 0x188   : > { %v439_v55 = vsel %vm436_vm5, %v431_v48, %v433_v54  ;;  %v440_v56 = vsel %vm436_vm5, %v433_v54, %v435_v53  ;;  %v833_v57 = vld [vmem:[#allocation2 + $0x70] sm:$0xff] }
 0x189   : > { %447 = vst [vmem:[#allocation2 + $0xe0] sm:$0xf] %v439_v55  ;;  %448 = vst [vmem:[#allocation2 + $0x148] sm:$0xf] %v440_v56  ;;  %906 = vmatpush1.msra.mxu0 %v833_v57 }
 0x18a   : > { %v454_v58 = vpop.permute.xlu1 %453 }
 0x18b   : > { %v452_v59 = vpop.permute.xlu0 %451 }
 0x18c   : > { %v461_v60 = vsel %vm459_vm6, %v452_v59, %v454_v58 }
 0x18d   : > { %469 = vst [vmem:[#allocation2 + $0x1d0] sm:$0xf0] %v461_v60 }
 0x18e   : > { %v458_v61 = vpop.permute.xlu1 %457 }
 0x18f   : > { %v456_v62 = vpop.permute.xlu0 %455 }
 0x190   : > { %v462_v63 = vsel %vm459_vm6, %v454_v58, %v456_v62  ;;  %v463_v10 = vsel %vm459_vm6, %v456_v62, %v458_v61 }
 0x191   : > { %470 = vst [vmem:[#allocation2 + $0xe0] sm:$0xf0] %v462_v63  ;;  %471 = vst [vmem:[#allocation2 + $0x148] sm:$0xf0] %v463_v10 }
 0x192   : > { %v450_v11 = vpop.permute.xlu1 %449 }
 0x193   : > { %v460_v12 = vsel %vm459_vm6, %v450_v11, %v452_v59  ;;  %v427_v13 = vpop.permute.xlu0 %426 }
 0x194   : > { %468 = vst [vmem:[#allocation2 + $0x150] sm:$0xf0] %v460_v12  ;;  %v437_v14 = vsel %vm436_vm5, %v427_v13, %v429_v49  ;;  %v830_v15 = vld [vmem:[#allocation2 + $0x1d0] sm:$0xff] }
 0x195   : > { %445 = vst [vmem:[#allocation2 + $0x150] sm:$0xf] %v437_v14  ;;  %907 = vmatprep.subr.mxu0 %v830_v15 }
 0x196   : > { %v766_v16 = vpop.permute.xlu1 %765 }
 0x197   : > { %v1787_v17 = vpop.permute.xlu0 %763 }
 0x198   : > { %v773_v18 = vsel %vm771_vm7, %v1787_v17, %v766_v16  ;;  %v832_v19 = vld [vmem:[#allocation2 + $0x148] sm:$0xff]  ;;  %v831_v20 = vld [vmem:[#allocation2 + $0xe0] sm:$0xff] }
 0x199   : > { %781 = vst [vmem:[#allocation2 + $0x60] sm:$0xf] %v773_v18  ;;  %978 = vmatprep.subr.mxu1 %v832_v19 }
 0x19a   : > { %979 = vmatpush1.msra.mxu1 %v831_v20  ;;  %v770_v21 = vpop.permute.xlu1 %769 }
 0x19b   : > { %980 = vmatprep.subr.mxu1 %v828_v22  ;;  %v768_v23 = vpop.permute.xlu0 %767 }
 0x19c   : > { %v774_v24 = vsel %vm771_vm7, %v766_v16, %v768_v23  ;;  %v775_v4 = vsel %vm771_vm7, %v768_v23, %v770_v21  ;;  %981 = vmatpush1.msra.mxu1 %v827_v8  ;;  %v829_v25 = vld [vmem:[#allocation2 + $0x150] sm:$0xff] }
 0x19d   : > { %782 = vst [vmem:[#allocation2 + $0x180] sm:$0xf] %v774_v24  ;;  %783 = vst [vmem:[#allocation2 + $0x1e0] sm:$0xf] %v775_v4  ;;  %908 = vmatpush1.msra.mxu0 %v829_v25  ;;  %982 = vmatprep.subr.mxu1 %v824_v26 }
 0x19e   : > { %909 = vmatprep.subr.mxu0 %v826_v7  ;;  %983 = vmatpush1.msra.mxu1 %v823_v3  ;;  %v789_v27 = vpop.permute.xlu1 %788 }
 0x19f   : > { %910 = vmatpush1.msra.mxu0 %v825_v0  ;;  %984 = vmatprep.subr.mxu1 %v820_v1  ;;  %v787_v28 = vpop.permute.xlu0 %786 }
 0x1a0   : > { %v796_v31 = vsel %vm794_vm8, %v787_v28, %v789_v27  ;;  %911 = vmatprep.subr.mxu0 %v822_v29  ;;  %985 = vmatpush1.msra.mxu1 %v819_v30 }
 0x1a1   : > { %804 = vst [vmem:[#allocation2 + $0x60] sm:$0xf0] %v796_v31  ;;  %912 = vmatpush1.msra.mxu0 %v821_v6  ;;  %986 = vmatprep.subr.mxu1 %v816_v32 }
 0x1a2   : > { %913 = vmatprep.subr.mxu0 %v818_v2  ;;  %987 = vmatpush1.msra.mxu1 %v815_v33  ;;  %v793_v34 = vpop.permute.xlu1 %792 }
 0x1a3   : > { %914 = vmatpush1.msra.mxu0 %v817_v35  ;;  %988 = vmatprep.subr.mxu1 %v812_v5  ;;  %v791_v36 = vpop.permute.xlu0 %790 }
 0x1a4   : > { %v797_v38 = vsel %vm794_vm8, %v789_v27, %v791_v36  ;;  %v798_v39 = vsel %vm794_vm8, %v791_v36, %v793_v34  ;;  %915 = vmatprep.subr.mxu0 %v814_v9  ;;  %989 = vmatpush1.msra.mxu1 %v811_v37 }
 0x1a5   : > { %805 = vst [vmem:[#allocation2 + $0x180] sm:$0xf0] %v797_v38  ;;  %806 = vst [vmem:[#allocation2 + $0x1e0] sm:$0xf0] %v798_v39  ;;  %916 = vmatpush1.msra.mxu0 %v813_v40 }
 0x1a6   : > { %917 = vmatprep.subr.mxu0 %v810_v41  ;;  %v785_v42 = vpop.permute.xlu1 %784 }
 0x1a7   : > { %v795_v44 = vsel %vm794_vm8, %v785_v42, %v787_v28  ;;  %918 = vmatpush1.msra.mxu0 %v809_v43  ;;  %v762_v45 = vpop.permute.xlu0 %761 }
 0x1a8   : > { %803 = vst [vmem:[#allocation2 + $0x1b0] sm:$0xf0] %v795_v44  ;;  %v772_v46 = vsel %vm771_vm7, %v762_v45, %v1787_v17  ;;  %v874_v47 = vld [vmem:[#allocation2 + $0x60] sm:$0xff] }
 0x1a9   : > { %780 = vst [vmem:[#allocation2 + $0x1b0] sm:$0xf] %v772_v46  ;;  %949 = vmatprep.subr.mxu0 %v874_v47 }
 0x1ac   : > { %v876_v48 = vld [vmem:[#allocation2 + $0x1e0] sm:$0xff] }
 0x1ad   : > { %v875_v49 = vld [vmem:[#allocation2 + $0x180] sm:$0xff]  ;;  %1020 = vmatprep.subr.mxu1 %v876_v48 }
 0x1ae   : > { %1021 = vmatpush2.msra.mxu1 %v875_v49 }
 0x1af   : > { %1023 = vmatmul.mubr.f32.vlgmr.msra.gmra.mxu1 %v807_v50 }
 0x1b0   : > { %v873_v51 = vld [vmem:[#allocation2 + $0x1b0] sm:$0xff] }
 0x1b1   : > { %950 = vmatpush2.msra.mxu0 %v873_v51 }
 0x1b2   : > { %952 = vmatmul.mubr.f32.vlgmr.msra.gmra.mxu0 %v807_v50 }
 0x1b4   : > { %v881_v52 = vpop.permute.xlu0 %880 }
 0x26f   : > { %v1024_v53 = vpop.f32.mrf.mxu1 }
 0x270   : > { %v1025_v54 = vadd.f32 %v1024_v53, %v881_v52 }
 0x271   : > { %v1026_v55 = vpop.f32.mrf.mxu1 }
 0x272   : > { %v953_v56 = vpop.f32.mrf.mxu0  ;;  %v1027_v57 = vadd.f32 %v1026_v55, %v881_v52  ;;  %v1031_v58 = vmax.f32 %v1025_v54, 0.0 }
 0x273   : > { %v954_v59 = vadd.f32 %v953_v56, %v881_v52 }
 0x274   : > { %v1032_v60 = vmax.f32 %v1027_v57, 0.0  ;;  %1035 = vst [vmem:[%s199_s7 + $0x10] sm:$0xff] %v1031_v58  ;;  %v955_v61 = vpop.f32.mrf.mxu0 }
 0x275   : > { %v1029_v62 = vmax.f32 %v954_v59, 0.0  ;;  %v956_v63 = vadd.f32 %v955_v61, %v881_v52 }
 0x276   : > { %1036 = vst [vmem:[%s199_s7 + $0x18] sm:$0xff] %v1032_v60 }
 0x277   : > { %1033 = vst [vmem:[%s199_s7] sm:$0xff] %v1029_v62  ;;  %v1030_v10 = vmax.f32 %v956_v63, 0.0 }
 0x279   : > { %1034 = vst [vmem:[%s199_s7 + $0x8] sm:$0xff] %v1030_v10 }
 0x27a   : > { %1301 = shalt.err (!%p1298_p3)
}
 0x27b   : > { %s1302_s17 = scalar_lea.hbm %s1050_s25, 512  ;;  %s1306_s24 = scalar_lea.hbm %s1838_s3, 1024 }
 0x27c   : > { %p1303_p11 = scmp.ne.s32.totalorder %s1050_s25, %s1302_s17  ;;  %p1307_p6 = scmp.lt.s32.totalorder %s1050_s25, %s1838_s3 }
 0x27d   : > { %p1308_p4 = scmp.lt.s32.totalorder %s1306_s24, %s1302_s17 }
 0x27e   : > { %p1304_p13 = pnand %p1303_p11, %p1855_p5 }
 0x27f   : > { %p1309_p8 = por %p1308_p4, %p1307_p6 }
 0x280   : > { %p1305_p7 = pneg %p1304_p13 }
 0x282   : > { %p1310_p9 = pnand %p1309_p8, %p1305_p7 }
 0x284   : > { %1313 = shalt.err (!%p1310_p9)
}
 0x285   : > { %1157 = dma.vmem_to_hbm [thread:$0]  (%p1855_p5), %s1053_s8, 512, %s1050_s25, %s1038_s26  }
 0x286 PF: > { %s1064_s29 = sand.u32 1, %s1344_s12   ;;  %p1856_p12 = scmp.ne.s32.totalorder %s1844_s19, 0 }
 0x287   : > { %p1857_p10 = scmp.ge.s32.totalorder %s1356_s15, 2  ;;  %s1065_s30 = scalar_lea.sflag [#allocation5], %s1064_s29 }
 0x289   : > { %p1168_p1 = pnand %p1857_p10, %p1856_p12 }
 0x28b   : > { %p1169_p2 = pneg %p1168_p1 }
 0x28d   : > { %1339 = dma.done.wait (%p1169_p2), %s1065_s30, 512  }
 0x28e   : > { %1341 = vsyncadd (%p1169_p2), %s1065_s30, 4294966784  ;;  %p17_p0 = scmp.ge.s32.totalorder %s1454_s23, 4   ;;  %s1858_s12 = smov %s1348_s13 }
 0x28f   : > { %s1859_s13 = smov %s1352_s14  ;;  %s1860_s14 = smov %s1481_s4 }
 0x290   : > { %s1861_s15 = smov %s1454_s23  ;;  %19 = sbr.rel (!%p17_p0) target bundleno = 6 (0x6), region = 81 }
 0x295   :  { %1070 = vsyncpa [#allocation4], 1 }
 0x296   :  { %1072 = vsyncpa [#allocation4 + $0x1], 1 }
 0x297   :  { %1073 = vsyncpa [#allocation7], 1 }
 0x298   :  { %1074 = vsyncpa [#allocation5], 1 }
 0x299   :  { %1076 = vsyncpa [#allocation5 + $0x1], 1 }

</bundles_post_ra>
